<compile_context>
chip_gen: v7x
topology: tpu7x:2x2x1
jax: 0.10.0
libtpu: 0.0.40
codegen_flags: <defaults>
</compile_context>

<pallas_src>
import functools

import jax
import jax.numpy as jnp
import numpy as np
from jax.experimental import pallas as pl
from jax.experimental.pallas import tpu as pltpu

# ----------------------------- configuration --------------------------------
IN_DIM = 2            # in_dim  (coordinate dim)
OUT_DIM = 2           # out_dim
H_DIM = 32            # h_dim          (small demo; module default is 64)
T_EMB_DIM = 32        # timestep_emb_dim (module default 64)
HALF = T_EMB_DIM // 2
EMB_SCALE = 10000.0       # embedding_scale in get_timestep_embedding
MAX_POSITIONS = 10000.0   # max_positions in sinusoidal_embedding
LANE = 128                # TPU lane width; N tiles are multiples of this
MAX_BN = 8192             # tile cap: keeps live intermediates well under VMEM

# packed-input row layout: [x0 x1 | xT0 xT1 | t | 1 | pad pad]
ROW_X, ROW_XT, ROW_T, ROW_ONE = 0, IN_DIM, 2 * IN_DIM, 2 * IN_DIM + 1
PACK_ROWS = 8
# packed bias/freq column (wb) row layout
ROW_DB2 = 0
ROW_QB2 = H_DIM
ROW_FREQ = 2 * H_DIM
ROW_B3 = 2 * H_DIM + HALF      # 8 rows: [db3(2); qb3(2); qb3(2); 0; 0]


# ------------------------------- fused kernel --------------------------------
def _aligned_sb_kernel(inp_ref, w1_ref, wh_ref, wb_ref, w3_ref, out_ref):
    """All three MLP heads on one lane-dense (8, BN) point tile.

    inp_ref : (8, BN)      packed per-point data (feature-major)
    w1_ref  : (3H, 8)      folded layer-1 weights for [drift; doobs; doobsT]
    wh_ref  : (3H, H)      [ [w1s|w1c] ; drift w2 ; doobs w2 ]   (all transposed)
    wb_ref  : (3H, 1)      [ db2 ; qb2 ; freqs(16) ; b3all(8) ; 0 ]
    w3_ref  : (24, H)      row-placed layer-3 weights -> packed (8, BN) output
    out_ref : (8, BN)      rows [drift(2) | doobs(2) | doobsT(2) | pad(2)]
    """
    f32 = jnp.float32
    H = H_DIM

    p = inp_ref[...]          # (8, BN)
    wh = wh_ref[...]          # (3H, H)
    wb = wb_ref[...]          # (3H, 1)
    w3 = w3_ref[...]          # (24, H)

    # ---- sinusoidal time embedding (drift head only) ----
    t_row = p[ROW_T:ROW_T + 1, :]                               # (1, BN)
    arg = wb[ROW_FREQ:ROW_FREQ + HALF, :] * t_row               # (HALF, BN)
    sincos = jnp.concatenate([jnp.sin(arg), jnp.cos(arg)], axis=0)   # (2*HALF, BN)

    # ---- layer 1: one K=8 matmul covers x / x_T / t / bias for all 3 heads ----
    big1 = jnp.dot(w1_ref[...], p, preferred_element_type=f32)       # (3H, BN)
    h1 = jnp.maximum(
        big1[0:H] + jnp.dot(wh[0:H], sincos, preferred_element_type=f32), 0.0)
    g1 = jnp.maximum(big1[H:2 * H], 0.0)
    r1 = jnp.maximum(big1[2 * H:3 * H], 0.0)

    # ---- layer 2 (drift uses dw2/db2; both doobs passes share qw2/qb2) ----
    db2 = wb[ROW_DB2:ROW_DB2 + H, :]
    qb2 = wb[ROW_QB2:ROW_QB2 + H, :]
    h2 = jnp.maximum(
        jnp.dot(wh[H:2 * H], h1, preferred_element_type=f32) + db2, 0.0)
    g2 = jnp.maximum(
        jnp.dot(wh[2 * H:3 * H], g1, preferred_element_type=f32) + qb2, 0.0)
    r2 = jnp.maximum(
        jnp.dot(wh[2 * H:3 * H], r1, preferred_element_type=f32) + qb2, 0.0)

    # ---- layer 3: row-placed (8, H) weights accumulate straight into the ----
    # ---- packed (8, BN) output slab; one bias add; one dense store.      ----
    out = jnp.dot(w3[0:8], h2, preferred_element_type=f32)
    out = out + jnp.dot(w3[8:16], g2, preferred_element_type=f32)
    out = out + jnp.dot(w3[16:24], r2, preferred_element_type=f32)
    out_ref[...] = out + wb[ROW_B3:ROW_B3 + 8, :]


# ------------------------------ pallas wrapper --------------------------------
def _choose_block_n(n_total, cap=MAX_BN):
    """Largest lane-multiple tile that divides n_total (capped).

    The grid is a serial loop on v5e/v6e, so fewest/biggest steps win; for
    large N on v7x the grid naturally has many steps for both TensorCores."""
    assert n_total % LANE == 0
    bn = min(n_total, cap)
    bn -= bn % LANE
    while n_total % bn:
        bn -= LANE
    return bn


def aligned_sb_forward(pos_t, pos_T, t, kparams):
    """AlignedSB.forward with pos_t and pos_T provided -> 3 outputs of (N, OUT_DIM)."""
    n = pos_t.shape[0]
    n_pad = (-n) % LANE
    n_total = n + n_pad

    # One packed feature-major input slab: rows [x, x_T, t, 1, 0, 0].
    ones = jnp.ones((n, 1), jnp.float32)
    pad2 = jnp.zeros((n, 2), jnp.float32)
    packed = jnp.concatenate([pos_t, pos_T, t, ones, pad2], axis=-1)   # (n, 8)
    if n_pad:
        packed = jnp.pad(packed, ((0, n_pad), (0, 0)))
    packed = packed.T                                                   # (8, n_total)

    bn = _choose_block_n(n_total)
    grid = (n_total // bn,)

    def row(i):   # per-point blocks advance along the lane axis with the grid
        return (0, i)

    def rep(i):   # weights: constant index_map -> VMEM-resident across the grid
        return (0, 0)

    in_specs = [
        pl.BlockSpec((PACK_ROWS, bn), row),         # packed points
        pl.BlockSpec((3 * H_DIM, PACK_ROWS), rep),  # w1all (folded layer-1)
        pl.BlockSpec((3 * H_DIM, H_DIM), rep),      # wh    (sincos | dw2 | qw2)
        pl.BlockSpec((3 * H_DIM, 1), rep),          # wb    (biases | freqs | b3)
        pl.BlockSpec((24, H_DIM), rep),             # w3    (row-placed layer-3)
    ]
    out_spec = pl.BlockSpec((PACK_ROWS, bn), row)
    out_shape = jax.ShapeDtypeStruct((PACK_ROWS, n_total), jnp.float32)

    out_packed = pl.pallas_call(
        _aligned_sb_kernel,
        grid=grid,
        in_specs=in_specs,
        out_specs=out_spec,
        out_shape=out_shape,
        compiler_params=pltpu.CompilerParams(
            dimension_semantics=("parallel",)),
    )(packed, kparams["w1all"], kparams["wh"], kparams["wb"], kparams["w3"])

    # One transpose + split back to the PyTorch (N, feat) convention.
    out_nm = out_packed.T[:n]                       # (n, 8)
    drift_x = out_nm[:, 0:OUT_DIM]
    doobs_x = out_nm[:, OUT_DIM:2 * OUT_DIM]
    doobs_xT = out_nm[:, 2 * OUT_DIM:3 * OUT_DIM]
    return drift_x, doobs_x, doobs_xT


# --------------------------- parameter construction ---------------------------
def _linear_init(key, fan_in, fan_out):
    """Deterministic PyTorch-Linear-style init (uniform +-1/sqrt(fan_in))."""
    kw, kb = jax.random.split(key)
    bound = 1.0 / float(np.sqrt(fan_in))
    w = jax.random.uniform(kw, (fan_in, fan_out), jnp.float32, -bound, bound)
    b = jax.random.uniform(kb, (1, fan_out), jnp.float32, -bound, bound)
    return w, b


def init_params(key):
    """Row-major (fan_in, fan_out) parameter dicts, as the pure-JAX reference uses."""
    ks = jax.random.split(key, 6)
    # --- SDEDrift MLP: (IN_DIM + T_EMB_DIM) -> H -> H -> OUT ---
    w1, b1 = _linear_init(ks[0], IN_DIM + T_EMB_DIM, H_DIM)
    w2, b2 = _linear_init(ks[1], H_DIM, H_DIM)
    w3, b3 = _linear_init(ks[2], H_DIM, OUT_DIM)
    freqs = EMB_SCALE * jnp.exp(
        -jnp.arange(HALF, dtype=jnp.float32) * (np.log(MAX_POSITIONS) / (HALF - 1)))
    drift_params = dict(
        freqs=freqs.reshape(1, HALF),
        w1x=w1[:IN_DIM],
        w1s=w1[IN_DIM:IN_DIM + HALF],
        w1c=w1[IN_DIM + HALF:],
        b1=b1, w2=w2, b2=b2, w3=w3, b3=b3,
    )
    # --- DoobHScore MLP: (2*IN_DIM + 1) -> H -> H -> OUT ---
    dw1, db1 = _linear_init(ks[3], 2 * IN_DIM + 1, H_DIM)
    dw2, db2 = _linear_init(ks[4], H_DIM, H_DIM)
    dw3, db3 = _linear_init(ks[5], H_DIM, OUT_DIM)
    doobs_params = dict(
        w1x=dw1[:IN_DIM],
        w1xT=dw1[IN_DIM:2 * IN_DIM],
        w1t=dw1[2 * IN_DIM:],
        b1=db1, w2=dw2, b2=db2, w3=dw3, b3=db3,
    )
    return drift_params, doobs_params


def prepare_kernel_params(dp, qp):
    """Pack / fold parameters into the kernel's 4 feature-major slabs."""
    H, I, O = H_DIM, IN_DIM, OUT_DIM
    a = lambda x: np.asarray(x, np.float32)

    # ---- w1all (3H, 8): folded layer-1 over packed rows [x, x_T, t, 1, 0, 0] ----
    dA = np.zeros((H, PACK_ROWS), np.float32)      # drift: uses x and bias only
    dA[:, ROW_X:ROW_X + I] = a(dp["w1x"]).T
    dA[:, ROW_ONE] = a(dp["b1"]).reshape(-1)
    qA = np.zeros((H, PACK_ROWS), np.float32)      # doobs(pos_t, pos_T, t)
    qA[:, ROW_X:ROW_X + I] = a(qp["w1x"]).T
    qA[:, ROW_XT:ROW_XT + I] = a(qp["w1xT"]).T
    qA[:, ROW_T] = a(qp["w1t"]).reshape(-1)
    qA[:, ROW_ONE] = a(qp["b1"]).reshape(-1)
    rA = np.zeros((H, PACK_ROWS), np.float32)      # doobs(pos_T, pos_T, 1): exact fold
    rA[:, ROW_XT:ROW_XT + I] = (a(qp["w1x"]) + a(qp["w1xT"])).T
    rA[:, ROW_ONE] = (a(qp["b1"]) + a(qp["w1t"])).reshape(-1)
    w1all = np.concatenate([dA, qA, rA], axis=0)                      # (3H, 8)

    # ---- wh (3H, H): [ [w1s|w1c] ; drift w2^T ; doobs w2^T ] ----
    wsc = np.concatenate([a(dp["w1s"]).T, a(dp["w1c"]).T], axis=1)    # (H, 2*HALF)
    wh = np.concatenate([wsc, a(dp["w2"]).T, a(qp["w2"]).T], axis=0)  # (3H, H)

    # ---- wb (3H, 1): [ db2 ; qb2 ; freqs ; b3all(8) ; 0 ] ----
    wb = np.zeros((3 * H, 1), np.float32)
    wb[ROW_DB2:ROW_DB2 + H, 0] = a(dp["b2"]).reshape(-1)
    wb[ROW_QB2:ROW_QB2 + H, 0] = a(qp["b2"]).reshape(-1)
    wb[ROW_FREQ:ROW_FREQ + HALF, 0] = a(dp["freqs"]).reshape(-1)
    wb[ROW_B3:ROW_B3 + O, 0] = a(dp["b3"]).reshape(-1)
    wb[ROW_B3 + O:ROW_B3 + 2 * O, 0] = a(qp["b3"]).reshape(-1)
    wb[ROW_B3 + 2 * O:ROW_B3 + 3 * O, 0] = a(qp["b3"]).reshape(-1)

    # ---- w3 (24, H): layer-3 weights row-placed into the packed 8-row output ----
    w3h = np.zeros((PACK_ROWS, H), np.float32)
    w3h[0:O] = a(dp["w3"]).T                       # drift -> out rows 0:2
    w3g = np.zeros((PACK_ROWS, H), np.float32)
    w3g[O:2 * O] = a(qp["w3"]).T                   # doobs -> out rows 2:4
    w3r = np.zeros((PACK_ROWS, H), np.float32)
    w3r[2 * O:3 * O] = a(qp["w3"]).T               # doobsT -> out rows 4:6
    w3 = np.concatenate([w3h, w3g, w3r], axis=0)                      # (24, H)

    return dict(w1all=jnp.asarray(w1all), wh=jnp.asarray(wh),
                wb=jnp.asarray(wb), w3=jnp.asarray(w3))


# ------------------------------ pure-JAX reference ----------------------------
def _ref_drift(x, t, p):
    arg = t * p["freqs"]
    emb = jnp.concatenate([jnp.sin(arg), jnp.cos(arg)], axis=-1)
    inp = jnp.concatenate([x, emb], axis=-1)
    w1 = jnp.concatenate([p["w1x"], p["w1s"], p["w1c"]], axis=0)
    h = jax.nn.relu(inp @ w1 + p["b1"])
    h = jax.nn.relu(h @ p["w2"] + p["b2"])
    return h @ p["w3"] + p["b3"]


def _ref_doobs(x, x_T, t, p):
    inp = jnp.concatenate([x, x_T, t], axis=-1)
    w1 = jnp.concatenate([p["w1x"], p["w1xT"], p["w1t"]], axis=0)
    h = jax.nn.relu(inp @ w1 + p["b1"])
    h = jax.nn.relu(h @ p["w2"] + p["b2"])
    return h @ p["w3"] + p["b3"]


def _ref_forward(pos_t, pos_T, t, dp, qp):
    drift_x = _ref_drift(pos_t, t, dp)
    doobs_x = _ref_doobs(pos_t, pos_T, t, qp)
    ones_t = jnp.ones_like(t)
    # drift(pos_T, 1) is computed by the original module but never returned or
    # consumed (use_drift_in_doobs=False) -> omitted.
    doobs_xT = _ref_doobs(pos_T, pos_T, ones_t, qp)
    return drift_x, doobs_x, doobs_xT


# ----------------------------------- main -------------------------------------
if __name__ == "__main__":
    key = jax.random.PRNGKey(0)
    k_data, k_params = jax.random.split(key)
    kp0, kpT, kt = jax.random.split(k_data, 3)

    N = 256   # small demo: one lane-dense grid step of 256 points
    pos_t = jax.random.normal(kp0, (N, IN_DIM), jnp.float32)
    pos_T = jax.random.normal(kpT, (N, IN_DIM), jnp.float32)
    t = jax.random.uniform(kt, (N, 1), jnp.float32)

    drift_params, doobs_params = init_params(k_params)
    kparams = prepare_kernel_params(drift_params, doobs_params)

    fwd = jax.jit(functools.partial(aligned_sb_forward, kparams=kparams))
    drift_x, doobs_x, doobs_xT = fwd(pos_t, pos_T, t)
    jax.block_until_ready((drift_x, doobs_x, doobs_xT))

    # correctness check against plain-JAX reference
    r_drift, r_doobs, r_doobsT = _ref_forward(pos_t, pos_T, t, drift_params, doobs_params)
    # drift goes through sin/cos of large (up to 1e4) arguments; range-reduction
    # differences between the Mosaic and XLA sin/cos implementations can reach
    # ~1e-3 absolute, so the drift tolerance is looser than the doobs ones.
    np.testing.assert_allclose(np.asarray(drift_x), np.asarray(r_drift),
                               rtol=1e-3, atol=5e-3)
    np.testing.assert_allclose(np.asarray(doobs_x), np.asarray(r_doobs),
                               rtol=1e-5, atol=1e-4)
    np.testing.assert_allclose(np.asarray(doobs_xT), np.asarray(r_doobsT),
                               rtol=1e-5, atol=1e-4)

    print("KERNEL_OK")
</pallas_src>

<mosaic_0001>
module attributes {stable_mosaic.version = 11 : i64} {
  func.func @_aligned_sb_kernel(%arg0: i32, %arg1: memref<8x256xf32, #tpu.memory_space<vmem>>, %arg2: memref<96x8xf32, #tpu.memory_space<vmem>>, %arg3: memref<96x32xf32, #tpu.memory_space<vmem>>, %arg4: memref<96x1xf32, #tpu.memory_space<vmem>>, %arg5: memref<24x32xf32, #tpu.memory_space<vmem>>, %arg6: memref<8x256xf32, #tpu.memory_space<vmem>>) attributes {dimension_semantics = [#tpu.dimension_semantics<parallel>], iteration_bounds = array<i64: 1>, scalar_prefetch = 0 : i64, scratch_operands = 0 : i64, tpu.core_type = #tpu.core_type<tc>, window_params = [{transform_indices = @transform_0, window_bounds = array<i64: 8, 256>}, {pipeline_mode = #tpu.pipeline_mode<synchronous>, transform_indices = @transform_1, window_bounds = array<i64: 96, 8>}, {pipeline_mode = #tpu.pipeline_mode<synchronous>, transform_indices = @transform_2, window_bounds = array<i64: 96, 32>}, {pipeline_mode = #tpu.pipeline_mode<synchronous>, transform_indices = @transform_3, window_bounds = array<i64: 96, 1>}, {pipeline_mode = #tpu.pipeline_mode<synchronous>, transform_indices = @transform_4, window_bounds = array<i64: 24, 32>}, {transform_indices = @transform_5, window_bounds = array<i64: 8, 256>}]} {
    %c0 = arith.constant 0 : index
    %c0_0 = arith.constant 0 : index
    %0 = vector.load %arg1[%c0, %c0_0] : memref<8x256xf32, #tpu.memory_space<vmem>>, vector<8x256xf32>
    %c0_1 = arith.constant 0 : index
    %c0_2 = arith.constant 0 : index
    %1 = vector.load %arg3[%c0_1, %c0_2] : memref<96x32xf32, #tpu.memory_space<vmem>>, vector<96x32xf32>
    %c0_3 = arith.constant 0 : index
    %c0_4 = arith.constant 0 : index
    %2 = vector.load %arg4[%c0_3, %c0_4] : memref<96x1xf32, #tpu.memory_space<vmem>>, vector<96x1xf32>
    %c0_5 = arith.constant 0 : index
    %c0_6 = arith.constant 0 : index
    %3 = vector.load %arg5[%c0_5, %c0_6] : memref<24x32xf32, #tpu.memory_space<vmem>>, vector<24x32xf32>
    %4 = vector.extract_strided_slice %0 {offsets = [4, 0], sizes = [1, 256], strides = [1, 1]} : vector<8x256xf32> to vector<1x256xf32>
    %5 = vector.extract_strided_slice %2 {offsets = [64, 0], sizes = [16, 1], strides = [1, 1]} : vector<96x1xf32> to vector<16x1xf32>
    %6 = vector.broadcast %5 : vector<16x1xf32> to vector<16x256xf32>
    %7 = vector.broadcast %4 : vector<1x256xf32> to vector<16x256xf32>
    %8 = arith.mulf %6, %7 : vector<16x256xf32>
    %9 = math.sin %8 : vector<16x256xf32>
    %10 = math.cos %8 : vector<16x256xf32>
    %11 = tpu.concatenate %9, %10 in 0 : vector<16x256xf32>, vector<16x256xf32> -> vector<32x256xf32>
    %c0_7 = arith.constant 0 : index
    %c0_8 = arith.constant 0 : index
    %12 = vector.load %arg2[%c0_7, %c0_8] : memref<96x8xf32, #tpu.memory_space<vmem>>, vector<96x8xf32>
    %cst = arith.constant dense<0.000000e+00> : vector<96x256xf32>
    %13 = tpu.matmul %12, %0, %cst {dimension_numbers = #tpu.dot_dimension_numbers<[1], [0], [0], [1], [0, 0, 1, 1], [], []>} : vector<96x8xf32>, vector<8x256xf32>, vector<96x256xf32> -> vector<96x256xf32>
    %14 = vector.extract_strided_slice %13 {offsets = [0, 0], sizes = [32, 256], strides = [1, 1]} : vector<96x256xf32> to vector<32x256xf32>
    %15 = vector.extract_strided_slice %1 {offsets = [0, 0], sizes = [32, 32], strides = [1, 1]} : vector<96x32xf32> to vector<32x32xf32>
    %cst_9 = arith.constant dense<0.000000e+00> : vector<32x256xf32>
    %16 = tpu.matmul %15, %11, %cst_9 {dimension_numbers = #tpu.dot_dimension_numbers<[1], [0], [0], [1], [0, 0, 1, 1], [], []>} : vector<32x32xf32>, vector<32x256xf32>, vector<32x256xf32> -> vector<32x256xf32>
    %17 = arith.addf %14, %16 : vector<32x256xf32>
    %cst_10 = arith.constant 0.000000e+00 : f32
    %18 = vector.broadcast %cst_10 : f32 to vector<32x256xf32>
    %19 = arith.maximumf %17, %18 : vector<32x256xf32>
    %20 = vector.extract_strided_slice %13 {offsets = [32, 0], sizes = [32, 256], strides = [1, 1]} : vector<96x256xf32> to vector<32x256xf32>
    %cst_11 = arith.constant 0.000000e+00 : f32
    %21 = vector.broadcast %cst_11 : f32 to vector<32x256xf32>
    %22 = arith.maximumf %20, %21 : vector<32x256xf32>
    %23 = vector.extract_strided_slice %13 {offsets = [64, 0], sizes = [32, 256], strides = [1, 1]} : vector<96x256xf32> to vector<32x256xf32>
    %cst_12 = arith.constant 0.000000e+00 : f32
    %24 = vector.broadcast %cst_12 : f32 to vector<32x256xf32>
    %25 = arith.maximumf %23, %24 : vector<32x256xf32>
    %26 = vector.extract_strided_slice %2 {offsets = [0, 0], sizes = [32, 1], strides = [1, 1]} : vector<96x1xf32> to vector<32x1xf32>
    %27 = vector.extract_strided_slice %2 {offsets = [32, 0], sizes = [32, 1], strides = [1, 1]} : vector<96x1xf32> to vector<32x1xf32>
    %28 = vector.extract_strided_slice %1 {offsets = [32, 0], sizes = [32, 32], strides = [1, 1]} : vector<96x32xf32> to vector<32x32xf32>
    %cst_13 = arith.constant dense<0.000000e+00> : vector<32x256xf32>
    %29 = tpu.matmul %28, %19, %cst_13 {dimension_numbers = #tpu.dot_dimension_numbers<[1], [0], [0], [1], [0, 0, 1, 1], [], []>} : vector<32x32xf32>, vector<32x256xf32>, vector<32x256xf32> -> vector<32x256xf32>
    %30 = vector.broadcast %26 : vector<32x1xf32> to vector<32x256xf32>
    %31 = arith.addf %29, %30 : vector<32x256xf32>
    %cst_14 = arith.constant 0.000000e+00 : f32
    %32 = vector.broadcast %cst_14 : f32 to vector<32x256xf32>
    %33 = arith.maximumf %31, %32 : vector<32x256xf32>
    %34 = vector.extract_strided_slice %1 {offsets = [64, 0], sizes = [32, 32], strides = [1, 1]} : vector<96x32xf32> to vector<32x32xf32>
    %cst_15 = arith.constant dense<0.000000e+00> : vector<32x256xf32>
    %35 = tpu.matmul %34, %22, %cst_15 {dimension_numbers = #tpu.dot_dimension_numbers<[1], [0], [0], [1], [0, 0, 1, 1], [], []>} : vector<32x32xf32>, vector<32x256xf32>, vector<32x256xf32> -> vector<32x256xf32>
    %36 = vector.broadcast %27 : vector<32x1xf32> to vector<32x256xf32>
    %37 = arith.addf %35, %36 : vector<32x256xf32>
    %cst_16 = arith.constant 0.000000e+00 : f32
    %38 = vector.broadcast %cst_16 : f32 to vector<32x256xf32>
    %39 = arith.maximumf %37, %38 : vector<32x256xf32>
    %40 = vector.extract_strided_slice %1 {offsets = [64, 0], sizes = [32, 32], strides = [1, 1]} : vector<96x32xf32> to vector<32x32xf32>
    %cst_17 = arith.constant dense<0.000000e+00> : vector<32x256xf32>
    %41 = tpu.matmul %40, %25, %cst_17 {dimension_numbers = #tpu.dot_dimension_numbers<[1], [0], [0], [1], [0, 0, 1, 1], [], []>} : vector<32x32xf32>, vector<32x256xf32>, vector<32x256xf32> -> vector<32x256xf32>
    %42 = vector.broadcast %27 : vector<32x1xf32> to vector<32x256xf32>
    %43 = arith.addf %41, %42 : vector<32x256xf32>
    %cst_18 = arith.constant 0.000000e+00 : f32
    %44 = vector.broadcast %cst_18 : f32 to vector<32x256xf32>
    %45 = arith.maximumf %43, %44 : vector<32x256xf32>
    %46 = vector.extract_strided_slice %3 {offsets = [0, 0], sizes = [8, 32], strides = [1, 1]} : vector<24x32xf32> to vector<8x32xf32>
    %cst_19 = arith.constant dense<0.000000e+00> : vector<8x256xf32>
    %47 = tpu.matmul %46, %33, %cst_19 {dimension_numbers = #tpu.dot_dimension_numbers<[1], [0], [0], [1], [0, 0, 1, 1], [], []>} : vector<8x32xf32>, vector<32x256xf32>, vector<8x256xf32> -> vector<8x256xf32>
    %48 = vector.extract_strided_slice %3 {offsets = [8, 0], sizes = [8, 32], strides = [1, 1]} : vector<24x32xf32> to vector<8x32xf32>
    %cst_20 = arith.constant dense<0.000000e+00> : vector<8x256xf32>
    %49 = tpu.matmul %48, %39, %cst_20 {dimension_numbers = #tpu.dot_dimension_numbers<[1], [0], [0], [1], [0, 0, 1, 1], [], []>} : vector<8x32xf32>, vector<32x256xf32>, vector<8x256xf32> -> vector<8x256xf32>
    %50 = arith.addf %47, %49 : vector<8x256xf32>
    %51 = vector.extract_strided_slice %3 {offsets = [16, 0], sizes = [8, 32], strides = [1, 1]} : vector<24x32xf32> to vector<8x32xf32>
    %cst_21 = arith.constant dense<0.000000e+00> : vector<8x256xf32>
    %52 = tpu.matmul %51, %45, %cst_21 {dimension_numbers = #tpu.dot_dimension_numbers<[1], [0], [0], [1], [0, 0, 1, 1], [], []>} : vector<8x32xf32>, vector<32x256xf32>, vector<8x256xf32> -> vector<8x256xf32>
    %53 = arith.addf %50, %52 : vector<8x256xf32>
    %54 = vector.extract_strided_slice %2 {offsets = [80, 0], sizes = [8, 1], strides = [1, 1]} : vector<96x1xf32> to vector<8x1xf32>
    %55 = vector.broadcast %54 : vector<8x1xf32> to vector<8x256xf32>
    %56 = arith.addf %53, %55 : vector<8x256xf32>
    %c0_22 = arith.constant 0 : index
    %c0_23 = arith.constant 0 : index
    %57 = vector.load %arg6[%c0_22, %c0_23] : memref<8x256xf32, #tpu.memory_space<vmem>>, vector<8x256xf32>
    tpu.vector_store %arg6[%c0_22, %c0_23], %56 {strides = array<i32>} : memref<8x256xf32, #tpu.memory_space<vmem>>, vector<8x256xf32>,
    return
  }
  func.func @transform_0(%arg0: i32) -> (i32, i32) {
    %c0_i32 = arith.constant 0 : i32
    %c0_i32_0 = arith.constant 0 : i32
    return %c0_i32, %arg0 : i32, i32
  }
  func.func @transform_1(%arg0: i32) -> (i32, i32) {
    %c0_i32 = arith.constant 0 : i32
    %c0_i32_0 = arith.constant 0 : i32
    %c0_i32_1 = arith.constant 0 : i32
    return %c0_i32, %c0_i32_0 : i32, i32
  }
  func.func @transform_2(%arg0: i32) -> (i32, i32) {
    %c0_i32 = arith.constant 0 : i32
    %c0_i32_0 = arith.constant 0 : i32
    %c0_i32_1 = arith.constant 0 : i32
    return %c0_i32, %c0_i32_0 : i32, i32
  }
  func.func @transform_3(%arg0: i32) -> (i32, i32) {
    %c0_i32 = arith.constant 0 : i32
    %c0_i32_0 = arith.constant 0 : i32
    %c0_i32_1 = arith.constant 0 : i32
    return %c0_i32, %c0_i32_0 : i32, i32
  }
  func.func @transform_4(%arg0: i32) -> (i32, i32) {
    %c0_i32 = arith.constant 0 : i32
    %c0_i32_0 = arith.constant 0 : i32
    %c0_i32_1 = arith.constant 0 : i32
    return %c0_i32, %c0_i32_0 : i32, i32
  }
  func.func @transform_5(%arg0: i32) -> (i32, i32) {
    %c0_i32 = arith.constant 0 : i32
    %c0_i32_0 = arith.constant 0 : i32
    return %c0_i32, %arg0 : i32, i32
  }
}

</mosaic_0001>

<bundles_post_ra>
// kernel: aligned_sb_forward.1
= control target key start
LH: loop header
LB: loop body
LE: loop exit
PB: predicated region body
PF: predicated region fallthrough
CT: control target
= control target key end

     0   :  { %10 = vsyncpa [#allocation3], 0  ;;  %s2629_s0 = inlined_call_operand.vmem [shape: f32[8,256], index: 0, kind: input, shape index: {}]   ;;  %s2630_s1 = inlined_call_operand.hbm [shape: f32[96,8], index: 1, kind: input, shape index: {}]   ;;  %s2631_s2 = inlined_call_operand.hbm [shape: f32[96,32], index: 2, kind: input, shape index: {}]   ;;  %s2632_s3 = inlined_call_operand.hbm [shape: f32[96,1], index: 3, kind: input, shape index: {}]   ;;  %s2633_s4 = inlined_call_operand.vmem [shape: f32[24,32], index: 4, kind: input, shape index: {}]   ;;  %s2634_s5 = inlined_call_operand.vmem [shape: f32[8,256], index: 5, kind: output, shape index: {}]  }
   0x1   :  { %11 = vsyncpa [#allocation5], 0  ;;  %s2101_s18 = smov [#allocation4]   ;;  %s2102_s20 = smov [#allocation2]  }
   0x2   :  { %s31_s19 = sshll.u32 %s2101_s18, 4  ;;  %s19_s21 = sshll.u32 %s2102_s20, 4  ;;  %s32_s19 = int_to_ptr.vmem [resolvable:$true] %s31_s19  ;;  %s2144_s21 = int_to_ptr.vmem [resolvable:$true] %s19_s21 }
   0x3   :  { %s2031_s24 = scalar_lea.hbm %s2631_s2, 1536 }
   0x4   :  { %p2032_p0 = scmp.ne.s32.totalorder %s2631_s2, %s2031_s24  ;;  %p2035_p1 = scmp.lt.u32.totalorder %s2031_s24, %s2631_s2 }
   0x6   :  { %p2037_p2 = pnand %p2035_p1, %p2032_p0 }
   0x8   :  { %2040 = shalt.err (!%p2037_p2)
}
   0x9   :  { %s2041_s29 = scalar_lea.vmem %s32_s19, 1536  ;;  %p2046_p4 = scmp.lt.s32.totalorder %s32_s19, %s32_s19 }
   0xa   :  { %p2042_p3 = scmp.ne.s32.totalorder %s32_s19, %s2041_s29  ;;  %p2047_p5 = scmp.lt.s32.totalorder %s2041_s29, %s2041_s29 }
   0xc   :  { %p2048_p6 = por %p2047_p5, %p2046_p4 }
   0xe   :  { %p2049_p7 = pnand %p2048_p6, %p2042_p3 }
  0x10   :  { %2052 = shalt.err (!%p2049_p7)
}
  0x11   :  { %s2103_s30 = smov 128   ;;  %s2104_s6 = smov 8  }
  0x12   :  { %37 = dma.hbm_to_vmem [thread:$0]  %s2631_s2, 1536, %s32_s19, [#allocation5], %s2103_s30, %s2103_s30, %s2104_s6  }
  0x13   :  { %s2053_s11 = scalar_lea.hbm %s2630_s1, 1536 }
  0x14   :  { %p2054_p8 = scmp.ne.s32.totalorder %s2630_s1, %s2053_s11  ;;  %p2057_p9 = scmp.lt.u32.totalorder %s2053_s11, %s2630_s1 }
  0x16   :  { %p2059_p10 = pnand %p2057_p9, %p2054_p8 }
  0x18   :  { %2062 = shalt.err (!%p2059_p10)
}
  0x19   :  { %s2063_s16 = scalar_lea.vmem %s2144_s21, 1536  ;;  %p2068_p12 = scmp.lt.s32.totalorder %s2144_s21, %s2144_s21 }
  0x1a   :  { %p2064_p11 = scmp.ne.s32.totalorder %s2144_s21, %s2063_s16  ;;  %p2069_p13 = scmp.lt.s32.totalorder %s2063_s16, %s2063_s16 }
  0x1c   :  { %p2070_p0 = por %p2069_p13, %p2068_p12 }
  0x1e   :  { %p2071_p1 = pnand %p2070_p0, %p2064_p11 }
  0x20   :  { %2074 = shalt.err (!%p2071_p1)
}
  0x21   :  { %25 = dma.hbm_to_vmem [thread:$0]  %s2630_s1, 1536, %s2144_s21, [#allocation3], %s2103_s30, %s2103_s30, %s2104_s6  }
  0x22   :  { %s2105_s18 = smov [#allocation6]   ;;  %s2075_s23 = scalar_lea.hbm %s2632_s3, 1536 }
  0x23   :  { %s43_s19 = sshll.u32 %s2105_s18, 4  ;;  %p2076_p2 = scmp.ne.s32.totalorder %s2632_s3, %s2075_s23  ;;  %s44_s19 = int_to_ptr.vmem [resolvable:$true] %s43_s19 }
  0x24   :  { %p2079_p3 = scmp.lt.u32.totalorder %s2075_s23, %s2632_s3 }
  0x26   :  { %p2081_p4 = pnand %p2079_p3, %p2076_p2 }
  0x28   :  { %2084 = shalt.err (!%p2081_p4)
}
  0x29   :  { %s2085_s28 = scalar_lea.vmem %s44_s19, 1536  ;;  %p2090_p6 = scmp.lt.s32.totalorder %s44_s19, %s44_s19 }
  0x2a   :  { %p2086_p5 = scmp.ne.s32.totalorder %s44_s19, %s2085_s28  ;;  %p2091_p7 = scmp.lt.s32.totalorder %s2085_s28, %s2085_s28 }
  0x2c   :  { %p2092_p8 = por %p2091_p7, %p2090_p6 }
  0x2e   :  { %p2093_p9 = pnand %p2092_p8, %p2086_p5 }
  0x30   :  { %2096 = shalt.err (!%p2093_p9)
}
  0x31   :  { %49 = dma.hbm_to_vmem [thread:$0]  %s2632_s3, 1536, %s44_s19, [#allocation5], %s2103_s30, %s2103_s30, %s2104_s6  }
  0x32   :  { %2097 = dma.done.wait [#allocation3], 1536  }
  0x33   :  { %2098 = vsyncadd [#allocation3], 4294965760 }
  0x34   :  { %2099 = dma.done.wait [#allocation5], 3072  }
  0x35   :  { %2100 = vsyncadd [#allocation5], 4294964224  ;;  %v2106_v0 = vmov 0   ;;  %v83_v1 = vld [vmem:[#allocation6 + $0x40] sm:$0xff]  ;;  %v84_v2 = vld [vmem:[#allocation6 + $0x48] sm:$0xff]  ;;  %v2107_v9 = vmov 0.0   ;;  %v99_v16 = vlaneseq }
  0x36   :  { %2013 = vset.pattern.permute.xlu0 %v2106_v0  ;;  %2014 = vset.pattern.permute.xlu1 %v2106_v0  ;;  %v62_v3 = vld [vmem:[%s2629_s0 + $0x8] sm:$0xff]  ;;  %v77_v4 = vld [vmem:[#allocation6 + $0x10] sm:$0xff]  ;;  %v79_v5 = vld [vmem:[#allocation6 + $0x20] sm:$0xff]  ;;  %vm951_vm0 = vcmask 64512  }
  0x37   :  { %91 = vperm.xlu0 %2013, %v83_v1   ;;  %988 = vmatprep.subr.mxu0 %v62_v3  ;;  %v61_v6 = vld [vmem:[%s2629_s0] sm:$0xff]  ;;  %v81_v7 = vld [vmem:[#allocation6 + $0x30] sm:$0xff]  ;;  %v940_v11 = vld [vmem:[#allocation2 + $0x8] sm:$0xff]  ;;  %v100_v18 = vshrl.u32 %v99_v16, 7  ;;  %v2108_v1 = vmov 683565275  }
  0x38   :  { %989 = vmatpush1.msra.mxu0 %v61_v6  ;;  %v85_v8 = vld [vmem:[#allocation6 + $0x50] sm:$0xff]  ;;  %1052 = vmatprep.mubr.f32.mxu0 %v2107_v9  ;;  %v939_v10 = vld [vmem:[#allocation2] sm:$0xff]  ;;  %v942_v13 = vld [vmem:[#allocation2 + $0x18] sm:$0xff] }
  0x39   :  { %1355 = vmatprep.mubr.f32.mxu1 %v2107_v9  ;;  %1885 = vmatmul.mubr.msk.f32.vlgmr.msra.gmra.mrb[0].mxu0 %vm951_vm0, %v939_v10  ;;  %v941_v12 = vld [vmem:[#allocation2 + $0x10] sm:$0xff]  ;;  %v943_v14 = vld [vmem:[#allocation2 + $0x20] sm:$0xff]  ;;  %v944_v15 = vld [vmem:[#allocation2 + $0x28] sm:$0xff]  ;;  %v101_v20 = vsub.s32 4, %v100_v18  ;;  %v2113_v18 = vmov 1326507024  }
  0x3a   :  { %1058 = vmatprep.mubr.f32.mxu0 %v2107_v9  ;;  %v945_v17 = vld [vmem:[#allocation2 + $0x30] sm:$0xff]  ;;  %v946_v19 = vld [vmem:[#allocation2 + $0x38] sm:$0xff]  ;;  %v947_v21 = vld [vmem:[#allocation2 + $0x40] sm:$0xff] }
  0x3b   :  { %96 = vperm.xlu0 %2013, %v84_v2   ;;  %v106_v22 = vrot.slane %v62_v3, %v101_v20  ;;  %v102_v23 = vrot.slane %v61_v6, %v101_v20  ;;  %v948_v24 = vld [vmem:[#allocation2 + $0x48] sm:$0xff]  ;;  %v949_v28 = vld [vmem:[#allocation2 + $0x50] sm:$0xff]  ;;  %v950_v51 = vld [vmem:[#allocation2 + $0x58] sm:$0xff]  ;;  %v2109_v3 = vmov 2475754826  }
  0x3c   :  { %v2110_v6 = vmov 2131351028  }
  0x3d   :  { %1886 = vmatmul.mubr.msk.f32.gmra.mrb[2].mxu0 %vm951_vm0, %v940_v11  ;;  %v2112_v11 = vmov 920167782  }
  0x3e   :  { %1064 = vmatprep.mubr.f32.mxu0 %v2107_v9 }
  0x3f   :  { %1271 = vperm.xlu0 %2013, %v77_v4  }
  0x41   :  { %1887 = vmatmul.mubr.msk.f32.gmra.mrb[4].mxu0 %vm951_vm0, %v941_v12 }
  0x42   :  { %1070 = vmatprep.mubr.f32.mxu0 %v2107_v9 }
  0x43   :  { %1390 = vperm.xlu0 %2013, %v79_v5  }
  0x45   :  { %1888 = vmatmul.mubr.msk.f32.gmra.mrb[6].mxu0 %vm951_vm0, %v942_v13 }
  0x46   :  { %1076 = vmatprep.mubr.f32.mxu0 %v2107_v9 }
  0x47   :  { %1400 = vperm.xlu0 %2013, %v81_v7  }
  0x49   :  { %1889 = vmatmul.mubr.msk.f32.gmra.mrb[8].mxu0 %vm951_vm0, %v943_v14 }
  0x4a   :  { %1082 = vmatprep.mubr.f32.mxu0 %v2107_v9 }
  0x4b   :  { %1840 = vperm.xlu0 %2013, %v85_v8   ;;  %v2111_v8 = vmov 2102212464  }
  0x4d   :  { %1890 = vmatmul.mubr.msk.f32.gmra.mrb[10].mxu0 %vm951_vm0, %v944_v15 }
  0x4e   :  { %1088 = vmatprep.mubr.f32.mxu0 %v2107_v9 }
  0x51   :  { %1891 = vmatmul.mubr.msk.f32.gmra.mrb[12].mxu0 %vm951_vm0, %v945_v17 }
  0x52   :  { %1094 = vmatprep.mubr.f32.mxu0 %v2107_v9 }
  0x55   :  { %1892 = vmatmul.mubr.msk.f32.gmra.mrb[14].mxu0 %vm951_vm0, %v946_v19 }
  0x56   :  { %1100 = vmatprep.mubr.f32.mxu0 %v2107_v9 }
  0x59   :  { %1893 = vmatmul.mubr.msk.f32.gmra.mrb[16].mxu0 %vm951_vm0, %v947_v21 }
  0x5a   :  { %1106 = vmatprep.mubr.f32.mxu0 %v2107_v9 }
  0x5d   :  { %1894 = vmatmul.mubr.msk.f32.gmra.mrb[18].mxu0 %vm951_vm0, %v948_v24 }
  0x5e   :  { %1112 = vmatprep.mubr.f32.mxu0 %v2107_v9 }
  0x61   :  { %1895 = vmatmul.mubr.msk.f32.gmra.mrb[20].mxu0 %vm951_vm0, %v949_v28 }
  0x62   :  { %1118 = vmatprep.mubr.f32.mxu0 %v2107_v9 }
  0x65   :  { %1896 = vmatmul.mubr.msk.f32.gmra.mrb[22].mxu0 %vm951_vm0, %v950_v51 }
  0x66   :  { %1202 = vmatprep.mubr.f32.mxu0 %v2107_v9 }
  0xb6   :  { %v92_v25 = vpop.permute.xlu0 %91 }
  0xb7   :  { %v2222_v26 = vmul.f32 %v106_v22, %v92_v25  ;;  %v2224_v27 = vmul.f32 %v102_v23, %v92_v25 }
  0xb9   :  { %v215_v29 = vand.u32 2147483647, %v2222_v26  ;;  %v218_v30 = vand.u32 2139095040, %v2222_v26  ;;  %v111_v31 = vand.u32 2147483647, %v2224_v27  ;;  %v114_v33 = vand.u32 2139095040, %v2224_v27 }
  0xba   :  { %v97_v32 = vpop.permute.xlu0 %96 }
  0xbb   :  { %v2232_v34 = vmul.f32 %v106_v22, %v97_v32  ;;  %v219_v35 = vshrl.u32 %v218_v30, 23  ;;  %v222_v36 = vand.u32 8388607, %v215_v29  ;;  %v2237_v37 = vmul.f32 %v102_v23, %v97_v32 }
  0xbc   :  { %v115_v38 = vshrl.u32 %v114_v33, 23  ;;  %v118_v39 = vand.u32 8388607, %v111_v31 }
  0xbd   :  { %v1857_v40 = vadd.s32 4294967169, %v219_v35  ;;  %v423_v41 = vand.u32 2147483647, %v2232_v34  ;;  %v223_v42 = vor.u32 8388608, %v222_v36  ;;  %v426_v43 = vand.u32 2139095040, %v2232_v34 }
  0xbe   :  { %v1853_v44 = vadd.s32 4294967169, %v115_v38  ;;  %v119_v47 = vor.u32 8388608, %v118_v39  ;;  %v319_v50 = vand.u32 2147483647, %v2237_v37  ;;  %v322_v62 = vand.u32 2139095040, %v2237_v37 }
  0xbf   :  { %v225_v45 = vadd.s32 1, %v1857_v40  ;;  %v430_v46 = vand.u32 8388607, %v423_v41  ;;  %v427_v48 = vshrl.u32 %v426_v43, 23  ;;  %v2248_v54 = vshll.u32 %v223_v42, 8 }
  0xc0   :  { %v121_v49 = vadd.s32 1, %v1853_v44  ;;  %v2251_v59 = vshll.u32 %v119_v47, 8  ;;  %v2258_v63 = vand.u32 8388607, %v319_v50 }
  0xc1   :  { %vm226_vm1 = vcmp.gt.s32.totalorder %v225_v45, 0  ;;  %v431_v52 = vor.u32 8388608, %v430_v46  ;;  %v1865_v55 = vadd.s32 4294967169, %v427_v48  ;;  %v2284_v48 = vshrl.u32 %v322_v62, 23 }
  0xc2   :  { %v227_v53 = vsel %vm226_vm1, %v225_v45, 0  ;;  %vm122_vm2 = vcmp.gt.s32.totalorder %v121_v49, 0 }
  0xc3   :  { %v228_v56 = vshrl.u32 %v227_v53, 5  ;;  %v229_v57 = vand.u32 31, %v227_v53  ;;  %v123_v58 = vsel %vm122_vm2, %v121_v49, 0  ;;  %v433_v60 = vadd.s32 1, %v1865_v55 }
  0xc4   :  { %v2253_v61 = vshll.u32 %v431_v52, 8  ;;  %v2262_v5 = vand.u32 31, %v123_v58  ;;  %v2282_v47 = vshrl.u32 %v123_v58, 5 }
  0xc5   :  { %v230_v0 = vsub.s32 32, %v229_v57  ;;  %v232_v2 = vshll.u32 %v2108_v1, %v229_v57  ;;  %v235_v4 = vshll.u32 %v2109_v3, %v229_v57  ;;  %v238_v7 = vshll.u32 %v2110_v6, %v229_v57 }
  0xc6   :  { %v241_v10 = vshll.u32 %v2111_v8, %v229_v57  ;;  %v244_v12 = vshll.u32 %v2112_v11, %v229_v57  ;;  %vm247_vm3 = vcmp.lt.s32.totalorder %v228_v56, 1  ;;  %vm248_vm4 = vcmp.lt.s32.totalorder %v228_v56, 2 }
  0xc7   :  { %v233_v13 = vshrl.u32 %v2109_v3, %v230_v0  ;;  %v236_v14 = vshrl.u32 %v2110_v6, %v230_v0  ;;  %v239_v15 = vshrl.u32 %v2111_v8, %v230_v0  ;;  %v231_v16 = vshrl.u32 %v2108_v1, %v230_v0 }
  0xc8   :  { %v242_v17 = vshrl.u32 %v2112_v11, %v230_v0  ;;  %v245_v19 = vshrl.u32 %v2113_v18, %v230_v0  ;;  %vm249_vm5 = vcmp.lt.s32.totalorder %v228_v56, 3  ;;  %vm434_vm6 = vcmp.gt.s32.totalorder %v433_v60, 0 }
  0xc9   :  { %v234_v20 = vor.u32 %v233_v13, %v232_v2  ;;  %v237_v21 = vor.u32 %v236_v14, %v235_v4  ;;  %v240_v22 = vor.u32 %v239_v15, %v238_v7  ;;  %vm250_vm7 = vcmp.lt.s32.totalorder %v228_v56, 4 }
  0xca   :  { %v243_v23 = vor.u32 %v242_v17, %v241_v10  ;;  %v246_v24 = vor.u32 %v245_v19, %v244_v12  ;;  %v435_v25 = vsel %vm434_vm6, %v433_v60, 0  ;;  %v2297_v56 = vsub.s32 32, %v2262_v5 }
  0xcb   :  { %v251_v28 = vsel %vm247_vm3, %v231_v16, %v234_v20  ;;  %v252_v30 = vsel %vm250_vm7, %v240_v22, 2102212464  ;;  %v255_v32 = vsel %vm247_vm3, %v234_v20, %v237_v21  ;;  %v259_v33 = vsel %vm247_vm3, %v237_v21, %v240_v22 }
  0xcc   :  { %v253_v35 = vsel %vm249_vm5, %v237_v21, %v252_v30  ;;  %v256_v36 = vsel %vm250_vm7, %v243_v23, 920167782  ;;  %v260_v38 = vsel %vm250_vm7, %v246_v24, 1326507024  ;;  %v436_v39 = vshrl.u32 %v435_v25, 5 }
  0xcd   :  { %v254_v40 = vsel %vm248_vm4, %v251_v28, %v253_v35  ;;  %v257_v42 = vsel %vm249_vm5, %v240_v22, %v256_v36  ;;  %v261_v43 = vsel %vm249_vm5, %v243_v23, %v260_v38  ;;  %v437_v44 = vand.u32 31, %v435_v25 }
  0xce   :  { %v258_v45 = vsel %vm248_vm4, %v255_v32, %v257_v42  ;;  %v262_v46 = vsel %vm248_vm4, %v259_v33, %v261_v43  ;;  %v270_v55 = vmul.u32 %v2248_v54, %v254_v40  ;;  %vm455_vm8 = vcmp.lt.s32.totalorder %v436_v39, 1 }
  0xcf   :  { %v2287_v49 = vmul.u32.u64.low %v2248_v54, %v262_v46  ;;  %v2288_v51 = vmul.u32.u64.high %v2248_v54, %v262_v46, %v2287_v49  ;;  %v2291_v52 = vmul.u32.u64.low %v2248_v54, %v258_v45  ;;  %v2292_v53 = vmul.u32.u64.high %v2248_v54, %v258_v45, %v2291_v52 }
  0xd0   :  { %v438_v57 = vsub.s32 32, %v437_v44  ;;  %v440_v58 = vshll.u32 %v2108_v1, %v437_v44  ;;  %v443_v60 = vshll.u32 %v2109_v3, %v437_v44  ;;  %v446_v62 = vshll.u32 %v2110_v6, %v437_v44 }
  0xd1   :  { %v449_v0 = vshll.u32 %v2111_v8, %v437_v44  ;;  %v452_v54 = vshll.u32 %v2112_v11, %v437_v44  ;;  %vm272_vm9 = vc.u32 %v2288_v51, %v2291_v52  ;;  %v273_v10 = vadd.s32 1, %v2292_v53 }
  0xd2   :  { %v441_v2 = vshrl.u32 %v2109_v3, %v438_v57  ;;  %v444_v4 = vshrl.u32 %v2110_v6, %v438_v57  ;;  %v447_v7 = vshrl.u32 %v2111_v8, %v438_v57  ;;  %v439_v12 = vshrl.u32 %v2108_v1, %v438_v57 }
  0xd3   :  { %v450_v13 = vshrl.u32 %v2112_v11, %v438_v57  ;;  %v453_v17 = vshrl.u32 %v2113_v18, %v438_v57  ;;  %v274_v19 = vsel %vm272_vm9, %v273_v10, %v2292_v53  ;;  %vm457_vm10 = vcmp.lt.s32.totalorder %v436_v39, 3 }
  0xd4   :  { %v442_v14 = vor.u32 %v441_v2, %v440_v58  ;;  %v445_v15 = vor.u32 %v444_v4, %v443_v60  ;;  %v448_v16 = vor.u32 %v447_v7, %v446_v62  ;;  %vm458_vm11 = vcmp.lt.s32.totalorder %v436_v39, 4 }
  0xd5   :  { %v451_v20 = vor.u32 %v450_v13, %v449_v0  ;;  %v275_v21 = vadd.s32 %v274_v19, %v270_v55  ;;  %v454_v22 = vor.u32 %v453_v17, %v452_v54  ;;  %vm456_vm12 = vcmp.lt.s32.totalorder %v436_v39, 2 }
  0xd6   :  { %v459_v23 = vsel %vm455_vm8, %v439_v12, %v442_v14  ;;  %v460_v24 = vsel %vm458_vm11, %v448_v16, 2102212464  ;;  %v463_v28 = vsel %vm455_vm8, %v442_v14, %v445_v15  ;;  %v467_v32 = vsel %vm455_vm8, %v445_v15, %v448_v16 }
  0xd7   :  { %v461_v25 = vsel %vm457_vm10, %v445_v15, %v460_v24  ;;  %v464_v30 = vsel %vm458_vm11, %v451_v20, 920167782  ;;  %v276_v33 = vadd.s32 536870912, %v275_v21  ;;  %v468_v36 = vsel %vm458_vm11, %v454_v22, 1326507024 }
  0xd8   :  { %v465_v35 = vsel %vm457_vm10, %v448_v16, %v464_v30  ;;  %v462_v38 = vsel %vm456_vm12, %v459_v23, %v461_v25  ;;  %v469_v42 = vsel %vm457_vm10, %v451_v20, %v468_v36  ;;  %v128_v43 = vshll.u32 %v2108_v1, %v2262_v5 }
  0xd9   :  { %v466_v40 = vsel %vm456_vm12, %v463_v28, %v465_v35  ;;  %v2322_v44 = vshrl.u32 %v276_v33, 30  ;;  %v470_v45 = vsel %vm456_vm12, %v467_v32, %v469_v42  ;;  %v129_v57 = vshrl.u32 %v2109_v3, %v2297_v56 }
  0xda   :  { %v2325_v46 = vmul.u32.u64.low %v2253_v61, %v466_v40  ;;  %v2326_v49 = vmul.u32.u64.high %v2253_v61, %v466_v40, %v2325_v46  ;;  %v2330_v53 = vmul.u32.u64.low %v2253_v61, %v470_v45  ;;  %v2331_v55 = vmul.u32.u64.high %v2253_v61, %v470_v45, %v2330_v53 }
  0xdb   :  { %v131_v39 = vshll.u32 %v2109_v3, %v2262_v5  ;;  %v278_v58 = vshll.u32 %v2322_v44, 30  ;;  %v132_v60 = vshrl.u32 %v2110_v6, %v2297_v56  ;;  %v134_v62 = vshll.u32 %v2110_v6, %v2262_v5 }
  0xdc   :  { %v135_v0 = vshrl.u32 %v2111_v8, %v2297_v56  ;;  %v478_v2 = vmul.u32 %v2253_v61, %v462_v38  ;;  %v130_v4 = vor.u32 %v129_v57, %v128_v43  ;;  %v137_v7 = vshll.u32 %v2111_v8, %v2262_v5 }
  0xdd   :  { %v138_v54 = vshrl.u32 %v2112_v11, %v2297_v56  ;;  %v2349_v10 = vsub.s32 %v275_v21, %v278_v58  ;;  %v481_v12 = vadd.s32 1, %v2326_v49  ;;  %v133_v13 = vor.u32 %v132_v60, %v131_v39 }
  0xde   :  { %v136_v14 = vor.u32 %v135_v0, %v134_v62  ;;  %vm480_vm13 = vc.u32 %v2331_v55, %v2325_v46  ;;  %v140_v61 = vshll.u32 %v2112_v11, %v2262_v5  ;;  %v141_v16 = vshrl.u32 %v2113_v18, %v2297_v56 }
  0xdf   :  { %v139_v15 = vor.u32 %v138_v54, %v137_v7  ;;  %v281_v17 = vsub.s32 0, %v2349_v10  ;;  %v482_v19 = vsel %vm480_vm13, %v481_v12, %v2326_v49  ;;  %v127_v20 = vshrl.u32 %v2108_v1, %v2297_v56 }
  0xe0   :  { %vm143_vm14 = vcmp.lt.s32.totalorder %v2282_v47, 1  ;;  %v483_v21 = vadd.s32 %v482_v19, %v478_v2  ;;  %v142_v22 = vor.u32 %v141_v16, %v140_v61  ;;  %vm145_vm15 = vcmp.lt.s32.totalorder %v2282_v47, 3 }
  0xe1   :  { %vm146_vm0 = vcmp.lt.s32.totalorder %v2282_v47, 4  ;;  %v1858_v5 = vmin.u32 %v281_v17, %v2349_v10  ;;  %v147_v23 = vsel %vm143_vm14, %v127_v20, %v130_v4  ;;  %v151_v25 = vsel %vm143_vm14, %v130_v4, %v133_v13 }
  0xe2   :  { %v148_v24 = vsel %vm146_vm0, %v136_v14, 2102212464  ;;  %v484_v28 = vadd.s32 536870912, %v483_v21  ;;  %v152_v32 = vsel %vm146_vm0, %v139_v15, 920167782  ;;  %v155_v33 = vsel %vm143_vm14, %v133_v13, %v136_v14 }
  0xe3   :  { %v149_v30 = vsel %vm145_vm15, %v133_v13, %v148_v24  ;;  %v283_v56 = vclz %v1858_v5  ;;  %vm144_vm1 = vcmp.lt.s32.totalorder %v2282_v47, 2  ;;  %v153_v35 = vsel %vm145_vm15, %v136_v14, %v152_v32 }
  0xe4   :  { %v156_v36 = vsel %vm146_vm0, %v142_v22, 1326507024  ;;  %v2371_v38 = vshrl.u32 %v484_v28, 30  ;;  %v150_v40 = vsel %vm144_vm1, %v147_v23, %v149_v30  ;;  %v154_v42 = vsel %vm144_vm1, %v151_v25, %v153_v35 }
  0xe5   :  { %v157_v43 = vsel %vm145_vm15, %v139_v15, %v156_v36  ;;  %v1859_v45 = vadd.s32 4294967294, %v283_v56  ;;  %v2376_v53 = vmul.u32.u64.low %v2251_v59, %v154_v42  ;;  %v2377_v57 = vmul.u32.u64.high %v2251_v59, %v154_v42, %v2376_v53 }
  0xe6   :  { %v158_v49 = vsel %vm144_vm1, %v155_v33, %v157_v43  ;;  %v486_v39 = vshll.u32 %v2371_v38, 30  ;;  %v1861_v62 = vadd.s32 4294967169, %v2284_v48  ;;  %v271_v0 = vadd.s32 %v2291_v52, %v2288_v51 }
  0xe7   :  { %v2382_v58 = vmul.u32.u64.low %v2251_v59, %v158_v49  ;;  %v2383_v60 = vmul.u32.u64.high %v2251_v59, %v158_v49, %v2382_v58  ;;  %vm1860_vm2 = vcmp.lt.s32.totalorder %v1859_v45, 0  ;;  %v166_v47 = vmul.u32 %v2251_v59, %v150_v40 }
  0xe8   :  { %v286_v2 = vsel %vm1860_vm2, 0, %v1859_v45  ;;  %v2389_v4 = vsub.s32 %v483_v21, %v486_v39  ;;  %v327_v7 = vor.u32 8388608, %v2258_v63  ;;  %v329_v54 = vadd.s32 1, %v1861_v62 }
  0xe9   :  { %v287_v12 = vsub.s32 32, %v286_v2  ;;  %v291_v13 = vsub.s32 4294967266, %v286_v2  ;;  %v169_v14 = vadd.s32 1, %v2377_v57  ;;  %v301_v15 = vsub.s32 4, %v2322_v44 }
  0xea   :  { %v288_v48 = vshll.u32 %v2349_v10, %v286_v2  ;;  %v489_v61 = vsub.s32 0, %v2389_v4  ;;  %vm168_vm3 = vc.u32 %v2383_v60, %v2376_v53  ;;  %vm330_vm4 = vcmp.gt.s32.totalorder %v329_v54, 0 }
  0xeb   :  { %v289_v59 = vshrl.u32 %v271_v0, %v287_v12  ;;  %v292_v51 = vadd.s32 127, %v291_v13  ;;  %v170_v52 = vsel %vm168_vm3, %v169_v14, %v2377_v57  ;;  %v331_v63 = vsel %vm330_vm4, %v329_v54, 0 }
  0xec   :  { %v1866_v16 = vmin.u32 %v489_v61, %v2389_v4  ;;  %v171_v17 = vadd.s32 %v170_v52, %v166_v47  ;;  %v333_v19 = vand.u32 31, %v331_v63  ;;  %vm217_vm5 = vcmp.lt.s32.totalorder %v2222_v26, 0 }
  0xed   :  { %v290_v20 = vor.u32 %v289_v59, %v288_v48  ;;  %v293_v21 = vshll.u32 %v292_v51, 23  ;;  %v479_v10 = vadd.s32 %v2325_v46, %v2331_v55  ;;  %v509_v24 = vsub.s32 4, %v2371_v38 }
  0xee   :  { %v491_v22 = vclz %v1866_v16  ;;  %v172_v5 = vadd.s32 536870912, %v171_v17  ;;  %v334_v23 = vsub.s32 32, %v333_v19  ;;  %vm2406_vm6 = vcmp.le.f32.partialorder %v215_v29, 0.7853982 }
  0xef   :  { %v294_v28 = vor.u32 4788187, %v293_v21  ;;  %v2410_v30 = vshrl.u32 %v331_v63, 5  ;;  %v2412_v32 = vshll.u32 %v327_v7, 8  ;;  %v2417_v46 = vsel %vm217_vm5, %v301_v15, %v2322_v44 }
  0xf0   :  { %v1867_v55 = vadd.s32 4294967294, %v491_v22  ;;  %v2419_v33 = vshrl.u32 %v172_v5, 30  ;;  %v336_v56 = vshll.u32 %v2108_v1, %v333_v19  ;;  %v337_v29 = vshrl.u32 %v2109_v3, %v334_v23 }
  0xf1   :  { %v295_v35 = vand.u32 2147483647, %v294_v28  ;;  %v297_v36 = vcvt.s32.f32 %v290_v20  ;;  %v339_v40 = vshll.u32 %v2109_v3, %v333_v19  ;;  %v340_v42 = vshrl.u32 %v2110_v6, %v334_v23 }
  0xf2   :  { %vm1868_vm7 = vcmp.lt.s32.totalorder %v1867_v55, 0  ;;  %v174_v43 = vshll.u32 %v2419_v33, 30  ;;  %v335_v45 = vshrl.u32 %v2108_v1, %v334_v23  ;;  %v342_v44 = vshll.u32 %v2110_v6, %v333_v19 }
  0xf3   :  { %v298_v49 = vmul.f32 %v297_v36, %v295_v35  ;;  %v494_v57 = vsel %vm1868_vm7, 0, %v1867_v55  ;;  %v343_v39 = vshrl.u32 %v2111_v8, %v334_v23  ;;  %v345_v58 = vshll.u32 %v2111_v8, %v333_v19 }
  0xf4   :  { %v495_v62 = vsub.s32 32, %v494_v57  ;;  %v499_v0 = vsub.s32 4294967266, %v494_v57  ;;  %v2430_v47 = vsub.s32 %v171_v17, %v174_v43  ;;  %v338_v3 = vor.u32 %v337_v29, %v336_v56 }
  0xf5   :  { %v299_v2 = vxor.u32 2147483648, %v298_v49  ;;  %v496_v7 = vshll.u32 %v2389_v4, %v494_v57  ;;  %v341_v54 = vor.u32 %v340_v42, %v339_v40  ;;  %v346_v12 = vshrl.u32 %v2112_v11, %v334_v23 }
  0xf6   :  { %v497_v1 = vshrl.u32 %v479_v10, %v495_v62  ;;  %v500_v13 = vadd.s32 127, %v499_v0  ;;  %v177_v6 = vsub.s32 0, %v2430_v47  ;;  %v349_v14 = vshrl.u32 %v2113_v18, %v334_v23 }
  0xf7   :  { %v300_v8 = vsel %vm217_vm5, %v299_v2, %v298_v49  ;;  %v344_v15 = vor.u32 %v343_v39, %v342_v44  ;;  %v347_v48 = vor.u32 %v346_v12, %v345_v58  ;;  %v348_v61 = vshll.u32 %v2112_v11, %v333_v19 }
  0xf8   :  { %v303_v4 = vsel %vm2406_vm6, %v2222_v26, %v300_v8  ;;  %v498_v59 = vor.u32 %v497_v1, %v496_v7  ;;  %v501_v51 = vshll.u32 %v500_v13, 23  ;;  %v1854_v52 = vmin.u32 %v177_v6, %v2430_v47 }
  0xf9   :  { %2015 = vcosq.f32 %v303_v4  ;;  %v350_v63 = vor.u32 %v349_v14, %v348_v61  ;;  %vm351_vm8 = vcmp.lt.s32.totalorder %v2410_v30, 1  ;;  %vm352_vm9 = vcmp.lt.s32.totalorder %v2410_v30, 2 }
  0xfa   :  { %2017 = vsinq.f32 %v303_v4  ;;  %v502_v18 = vor.u32 4788187, %v501_v51  ;;  %v179_v16 = vclz %v1854_v52  ;;  %vm354_vm10 = vcmp.lt.s32.totalorder %v2410_v30, 4 }
  0xfb   :  { %vm353_vm11 = vcmp.lt.s32.totalorder %v2410_v30, 3  ;;  %v356_v11 = vsel %vm354_vm10, %v344_v15, 2102212464  ;;  %v359_v17 = vsel %vm351_vm8, %v338_v3, %v341_v54  ;;  %v360_v19 = vsel %vm354_vm10, %v347_v48, 920167782 }
  0xfc   :  { %v503_v20 = vand.u32 2147483647, %v502_v18  ;;  %v505_v21 = vcvt.s32.f32 %v498_v59  ;;  %v1855_v10 = vadd.s32 4294967294, %v179_v16  ;;  %v361_v22 = vsel %vm353_vm11, %v344_v15, %v360_v19 }
  0xfd   :  { %v355_v5 = vsel %vm351_vm8, %v335_v45, %v338_v3  ;;  %v362_v23 = vsel %vm352_vm9, %v359_v17, %v361_v22  ;;  %v363_v28 = vsel %vm351_vm8, %v341_v54, %v344_v15  ;;  %v364_v55 = vsel %vm354_vm10, %v350_v63, 1326507024 }
  0xfe   :  { %v506_v56 = vmul.f32 %v505_v21, %v503_v20  ;;  %vm1856_vm12 = vcmp.lt.s32.totalorder %v1855_v10, 0  ;;  %v357_v29 = vsel %vm353_vm11, %v341_v54, %v356_v11  ;;  %v365_v35 = vsel %vm353_vm11, %v347_v48, %v364_v55 }
  0xff   :  { %v182_v36 = vsel %vm1856_vm12, 0, %v1855_v10  ;;  %v366_v40 = vsel %vm352_vm9, %v363_v28, %v365_v35  ;;  %v2458_v42 = vmul.u32.u64.low %v2412_v32, %v362_v23  ;;  %v2459_v43 = vmul.u32.u64.high %v2412_v32, %v362_v23, %v2458_v42 }
 0x100   :  { %vm425_vm13 = vcmp.lt.s32.totalorder %v2232_v34, 0  ;;  %v507_v45 = vxor.u32 2147483648, %v506_v56  ;;  %v187_v44 = vsub.s32 4294967266, %v182_v36  ;;  %v358_v49 = vsel %vm352_vm9, %v355_v5, %v357_v29 }
 0x101   :  { %v2466_v57 = vmul.u32.u64.low %v2412_v32, %v366_v40  ;;  %v2467_v39 = vmul.u32.u64.high %v2412_v32, %v366_v40, %v2466_v57  ;;  %v304_v58 = vsel %vm2406_vm6, 0, %v2417_v46  ;;  %vm2474_vm14 = vcmp.le.f32.partialorder %v423_v41, 0.7853982 }
 0x102   :  { %v508_v0 = vsel %vm425_vm13, %v507_v45, %v506_v56  ;;  %v308_v3 = vadd.s32 3, %v304_v58  ;;  %v510_v30 = vsel %vm425_vm13, %v509_v24, %v2371_v38  ;;  %v377_v25 = vadd.s32 1, %v2459_v43 }
 0x103   :  { %v2016_v2 = vpop.eup %2015  ;;  %v511_v7 = vsel %vm2474_vm14, %v2232_v34, %v508_v0  ;;  %v188_v54 = vadd.s32 127, %v187_v44  ;;  %v374_v41 = vmul.u32 %v2412_v32, %v358_v49  ;;  %vm376_vm15 = vc.u32 %v2467_v39, %v2458_v42 }
 0x104   :  { %v2018_v46 = vpop.eup %2017  ;;  %2019 = vcosq.f32 %v511_v7  ;;  %v309_v12 = vand.u32 3, %v308_v3  ;;  %v2490_v38 = vsel %vm2474_vm14, 0, %v510_v30  ;;  %v167_v24 = vadd.s32 %v2376_v53, %v2383_v60 }
 0x105   :  { %2021 = vsinq.f32 %v511_v7  ;;  %v312_v1 = vxor.u32 2147483648, %v2018_v46  ;;  %v378_v13 = vsel %vm376_vm15, %v377_v25, %v2459_v43  ;;  %v183_v6 = vsub.s32 32, %v182_v36 }
 0x106   :  { %v379_v14 = vadd.s32 %v378_v13, %v374_v41  ;;  %vm311_vm0 = vcmp.eq.s32.totalorder %v309_v12, 0  ;;  %v315_v8 = vxor.u32 2147483648, %v2016_v2  ;;  %v189_v32 = vshll.u32 %v188_v54, 23 }
 0x107   :  { %v313_v15 = vsel %vm311_vm0, %v2016_v2, %v312_v1  ;;  %vm314_vm1 = vcmp.eq.s32.totalorder %v309_v12, 2  ;;  %v516_v48 = vadd.s32 3, %v2490_v38  ;;  %vm310_vm2 = vcmp.lt.s32.totalorder %v309_v12, 2 }
 0x108   :  { %v380_v61 = vadd.s32 536870912, %v379_v14  ;;  %v316_v4 = vsel %vm314_vm1, %v315_v8, %v2018_v46  ;;  %v723_v59 = vand.u32 3, %v304_v58  ;;  %vm307_vm3 = vweird.f32 %v2222_v26 }
 0x109   :  { %v317_v51 = vsel %vm310_vm2, %v313_v15, %v316_v4  ;;  %v185_v52 = vshrl.u32 %v167_v24, %v183_v6  ;;  %v190_v63 = vor.u32 4788187, %v189_v32  ;;  %v517_v18 = vand.u32 3, %v516_v48 }
 0x10a   :  { %v2497_v53 = vshrl.u32 %v380_v61, 30  ;;  %v318_v60 = vsel %vm307_vm3, nan, %v317_v51  ;;  %v184_v16 = vshll.u32 %v2430_v47, %v182_v36  ;;  %vm725_vm4 = vcmp.eq.s32.totalorder %v723_v59, 0 }
 0x10b   :  { %v727_v19 = vsel %vm725_vm4, %v2016_v2, %v312_v1  ;;  %vm728_vm5 = vcmp.eq.s32.totalorder %v723_v59, 2  ;;  %v191_v5 = vand.u32 2147483647, %v190_v63  ;;  %vm522_vm6 = vcmp.eq.s32.totalorder %v517_v18, 2 }
 0x10c   :  { %v382_v11 = vshll.u32 %v2497_v53, 30  ;;  %v186_v21 = vor.u32 %v185_v52, %v184_v16  ;;  %v730_v28 = vsel %vm728_vm5, %v315_v8, %v2018_v46  ;;  %vm519_vm7 = vcmp.eq.s32.totalorder %v517_v18, 0 }
 0x10d   :  { %vm724_vm8 = vcmp.lt.s32.totalorder %v723_v59, 2  ;;  %vm515_vm9 = vweird.f32 %v2232_v34  ;;  %vm518_vm10 = vcmp.lt.s32.totalorder %v517_v18, 2  ;;  %v375_v3 = vadd.s32 %v2458_v42, %v2467_v39  ;;  %v63_v34 = vld [vmem:[#allocation4] sm:$0xff] }
 0x10e   :  { %v2503_v17 = vpop.eup %2019  ;;  %v383_v10 = vsub.s32 %v379_v14, %v382_v11  ;;  %v731_v29 = vsel %vm724_vm8, %v727_v19, %v730_v28  ;;  %v193_v35 = vcvt.s32.f32 %v186_v21  ;;  %vm113_vm12 = vcmp.lt.s32.totalorder %v2224_v27, 0 }
 0x10f   :  { %v2505_v20 = vpop.eup %2021  ;;  %v523_v22 = vxor.u32 2147483648, %v2503_v17  ;;  %v2518_v43 = vsel %vm307_vm3, nan, %v731_v29  ;;  %vm2529_vm13 = vcmp.le.f32.partialorder %v111_v31, 0.7853982  ;;  %v197_v1 = vsub.s32 4, %v2419_v33 }
 0x110   :  { %v520_v23 = vxor.u32 2147483648, %v2505_v20  ;;  %v385_v55 = vsub.s32 0, %v383_v10  ;;  %v194_v44 = vmul.f32 %v193_v35, %v191_v5  ;;  %v405_v6 = vsub.s32 4, %v2497_v53 }
 0x111   :  { %v524_v47 = vsel %vm522_vm6, %v523_v22, %v2505_v20  ;;  %v198_v31 = vsel %vm113_vm12, %v197_v1, %v2419_v33  ;;  %vm321_vm14 = vcmp.lt.s32.totalorder %v2237_v37, 0  ;;  %vm320_vm15 = vcmp.le.f32.partialorder %v319_v50, 0.7853982 }
 0x112   :  { %v521_v56 = vsel %vm519_vm7, %v2503_v17, %v520_v23  ;;  %v1862_v36 = vmin.u32 %v385_v55, %v383_v10  ;;  %v195_v62 = vxor.u32 2147483648, %v194_v44  ;;  %v406_v32 = vsel %vm321_vm14, %v405_v6, %v2497_v53 }
 0x113   :  { %v525_v40 = vsel %vm518_vm10, %v521_v56, %v524_v47  ;;  %v200_v48 = vsel %vm2529_vm13, 0, %v198_v31  ;;  %v408_v4 = vsel %vm320_vm15, 0, %v406_v32  ;;  %vm203_vm2 = vweird.f32 %v2224_v27 }
 0x114   :  { %v526_v45 = vsel %vm515_vm9, nan, %v525_v40  ;;  %v387_v49 = vclz %v1862_v36  ;;  %v196_v26 = vsel %vm113_vm12, %v195_v62, %v194_v44  ;;  %v204_v59 = vadd.s32 3, %v200_v48 }
 0x115   :  { %v1916_v57 = vpack.c.bf16 %v526_v45, %v318_v60  ;;  %v199_v42 = vsel %vm2529_vm13, %v2224_v27, %v196_v26  ;;  %v412_v33 = vadd.s32 3, %v408_v4  ;;  %v929_v60 = vand.u32 3, %v2490_v38  ;;  %v66_v27 = vld [vmem:[#allocation4 + $0x18] sm:$0xff] }
 0x116   :  { %v1863_v58 = vadd.s32 4294967294, %v387_v49  ;;  %2023 = vcosq.f32 %v199_v42  ;;  %v205_v63 = vand.u32 3, %v204_v59  ;;  %v620_v50 = vand.u32 3, %v200_v48 }
 0x117   :  { %1917 = vmatprep.subr.bf16.mxu0 %v1916_v57  ;;  %2025 = vsinq.f32 %v199_v42  ;;  %v413_v16 = vand.u32 3, %v412_v33  ;;  %vm931_vm0 = vcmp.eq.s32.totalorder %v929_v60, 0  ;;  %vm934_vm1 = vcmp.eq.s32.totalorder %v929_v60, 2 }
 0x118   :  { %vm1864_vm11 = vcmp.lt.s32.totalorder %v1863_v58, 0  ;;  %v933_v11 = vsel %vm931_vm0, %v2503_v17, %v520_v23  ;;  %v936_v19 = vsel %vm934_vm1, %v523_v22, %v2505_v20  ;;  %v826_v21 = vand.u32 3, %v408_v4 }
 0x119   :  { %v390_v0 = vsel %vm1864_vm11, 0, %v1863_v58  ;;  %vm206_vm3 = vcmp.lt.s32.totalorder %v205_v63, 2  ;;  %vm207_vm4 = vcmp.eq.s32.totalorder %v205_v63, 0  ;;  %vm210_vm5 = vcmp.eq.s32.totalorder %v205_v63, 2 }
 0x11a   :  { %v391_v30 = vsub.s32 32, %v390_v0  ;;  %v395_v2 = vsub.s32 4294967266, %v390_v0  ;;  %v392_v7 = vshll.u32 %v383_v10, %v390_v0  ;;  %vm930_vm6 = vcmp.lt.s32.totalorder %v929_v60, 2 }
 0x11b   :  { %vm414_vm7 = vcmp.lt.s32.totalorder %v413_v16, 2  ;;  %vm415_vm8 = vcmp.eq.s32.totalorder %v413_v16, 0  ;;  %vm418_vm10 = vcmp.eq.s32.totalorder %v413_v16, 2  ;;  %v937_v47 = vsel %vm930_vm6, %v933_v11, %v936_v19 }
 0x11c   :  { %v393_v25 = vshrl.u32 %v375_v3, %v391_v30  ;;  %v396_v46 = vadd.s32 127, %v395_v2  ;;  %vm622_vm11 = vcmp.eq.s32.totalorder %v620_v50, 0  ;;  %vm625_vm12 = vcmp.eq.s32.totalorder %v620_v50, 2  ;;  %v64_v2 = vld [vmem:[#allocation4 + $0x8] sm:$0xff]  ;;  %v1078_v26 = vpop.f32.mrb[8].mxu0 }
 0x11d   :  { %vm827_vm13 = vcmp.lt.s32.totalorder %v826_v21, 2  ;;  %vm411_vm0 = vweird.f32 %v2237_v37  ;;  %v938_v45 = vsel %vm515_vm9, nan, %v937_v47  ;;  %vm621_vm1 = vcmp.lt.s32.totalorder %v620_v50, 2 }
 0x11e   :  { %v394_v41 = vor.u32 %v393_v25, %v392_v7  ;;  %v397_v12 = vshll.u32 %v396_v46, 23  ;;  %v1920_v0 = vpack.c.bf16 %v938_v45, %v2518_v43  ;;  %vm1125_vm9 = vcmask 261120   ;;  %v65_v43 = vld [vmem:[#allocation4 + $0x10] sm:$0xff]  ;;  %v1080_v7 = vpop.f32.mrb[9].mxu0 }
 0x11f   :  { %v1243_v25 = vmax.f32 %v1078_v26, 0.0  ;;  %v1244_v46 = vmax.f32 %v1080_v7, 0.0 }
 0x120   :  { %v398_v39 = vor.u32 4788187, %v397_v12  ;;  %v401_v13 = vcvt.s32.f32 %v394_v41  ;;  %v2024_v51 = vpop.eup %2023  ;;  %v1084_v54 = vpop.f32.mrb[10].mxu0 }
 0x121   :  { %v2026_v52 = vpop.eup %2025  ;;  %v211_v18 = vxor.u32 2147483648, %v2024_v51  ;;  %v1245_v41 = vmax.f32 %v1084_v54, 0.0  ;;  %v1086_v12 = vpop.f32.mrb[11].mxu0  ;;  %v69_v54 = vld [vmem:[#allocation4 + $0x30] sm:$0xff] }
 0x122   :  { %v399_v24 = vand.u32 2147483647, %v398_v39  ;;  %v208_v53 = vxor.u32 2147483648, %v2026_v52  ;;  %v1246_v42 = vmax.f32 %v1086_v12, 0.0  ;;  %v71_v12 = vld [vmem:[#allocation4 + $0x40] sm:$0xff] }
 0x123   :  { %v212_v5 = vsel %vm210_vm5, %v211_v18, %v2026_v52  ;;  %v627_v35 = vsel %vm625_vm12, %v211_v18, %v2026_v52  ;;  %v2574_v39 = vpack.c.bf16 %v1245_v41, %v1243_v25  ;;  %v67_v25 = vld [vmem:[#allocation4 + $0x20] sm:$0xff]  ;;  %v70_v41 = vld [vmem:[#allocation4 + $0x38] sm:$0xff] }
 0x124   :  { %v402_v14 = vmul.f32 %v401_v13, %v399_v24  ;;  %v209_v10 = vsel %vm207_vm4, %v2024_v51, %v208_v53  ;;  %v624_v29 = vsel %vm622_vm11, %v2024_v51, %v208_v53  ;;  %v2576_v1 = vpack.c.bf16 %v1246_v42, %v1244_v46  ;;  %v1090_v24 = vpop.f32.mrb[12].mxu0  ;;  %v68_v46 = vld [vmem:[#allocation4 + $0x28] sm:$0xff] }
 0x125   :  { %v213_v17 = vsel %vm206_vm3, %v209_v10, %v212_v5  ;;  %v628_v62 = vsel %vm621_vm1, %v624_v29, %v627_v35  ;;  %v1092_v13 = vpop.f32.mrb[13].mxu0  ;;  %v1247_v6 = vmax.f32 %v1090_v24, 0.0  ;;  %v72_v42 = vld [vmem:[#allocation4 + $0x48] sm:$0xff] }
 0x126   :  { %v403_v8 = vxor.u32 2147483648, %v402_v14  ;;  %v214_v49 = vsel %vm203_vm2, nan, %v213_v17  ;;  %v76_v17 = vld [vmem:[#allocation6 + $0x8] sm:$0xff] }
 0x128   :  { %v404_v15 = vsel %vm321_vm14, %v403_v8, %v402_v14  ;;  %vm831_vm14 = vcmp.eq.s32.totalorder %v826_v21, 2  ;;  %v1248_v14 = vmax.f32 %v1092_v13, 0.0  ;;  %v1096_v31 = vpop.f32.mrb[14].mxu0 }
 0x129   :  { %v407_v61 = vsel %vm320_vm15, %v2237_v37, %v404_v15  ;;  %vm828_vm15 = vcmp.eq.s32.totalorder %v826_v21, 0  ;;  %v629_v37 = vsel %vm203_vm2, nan, %v628_v62  ;;  %v1249_v8 = vmax.f32 %v1096_v31, 0.0  ;;  %v1098_v32 = vpop.f32.mrb[15].mxu0 }
 0x12a   :  { %2027 = vcosq.f32 %v407_v61  ;;  %v1250_v15 = vmax.f32 %v1098_v32, 0.0 }
 0x12b   :  { %2029 = vsinq.f32 %v407_v61  ;;  %v2578_v48 = vpack.c.bf16 %v1249_v8, %v1247_v6 }
 0x12c   :  { %v1936_v61 = vpack.c.bf16 %v1250_v15, %v1248_v14  ;;  %v1102_v4 = vpop.f32.mrb[16].mxu0 }
 0x12d   :  { %v1104_v59 = vpop.f32.mrb[17].mxu0  ;;  %v1251_v51 = vmax.f32 %v1102_v4, 0.0 }
 0x12e   :  { %v1252_v33 = vmax.f32 %v1104_v59, 0.0 }
 0x130   :  { %v1108_v52 = vpop.f32.mrb[18].mxu0 }
 0x131   :  { %v1253_v60 = vmax.f32 %v1108_v52, 0.0  ;;  %v1110_v63 = vpop.f32.mrb[19].mxu0 }
 0x132   :  { %v1254_v53 = vmax.f32 %v1110_v63, 0.0 }
 0x133   :  { %v2580_v18 = vpack.c.bf16 %v1253_v60, %v1251_v51 }
 0x134   :  { %v2028_v38 = vpop.eup %2027  ;;  %v1940_v16 = vpack.c.bf16 %v1254_v53, %v1252_v33  ;;  %v1114_v50 = vpop.f32.mrb[20].mxu0 }
 0x135   :  { %v2030_v28 = vpop.eup %2029  ;;  %v419_v55 = vxor.u32 2147483648, %v2028_v38  ;;  %v1116_v11 = vpop.f32.mrb[21].mxu0  ;;  %v1255_v19 = vmax.f32 %v1114_v50, 0.0 }
 0x136   :  { %v416_v23 = vxor.u32 2147483648, %v2030_v28  ;;  %v1256_v21 = vmax.f32 %v1116_v11, 0.0  ;;  %v1272_v53 = vpop.permute.xlu0 %1271 }
 0x137   :  { %v420_v20 = vsel %vm418_vm10, %v419_v55, %v2030_v28  ;;  %v833_v22 = vsel %vm831_vm14, %v419_v55, %v2030_v28 }
 0x138   :  { %v417_v56 = vsel %vm415_vm8, %v2028_v38, %v416_v23  ;;  %v830_v36 = vsel %vm828_vm15, %v2028_v38, %v416_v23  ;;  %v1120_v38 = vpop.f32.mrb[22].mxu0  ;;  %v75_v23 = vld [vmem:[#allocation6] sm:$0xff] }
 0x139   :  { %v421_v40 = vsel %vm414_vm7, %v417_v56, %v420_v20  ;;  %v834_v44 = vsel %vm827_vm13, %v830_v36, %v833_v22  ;;  %v1257_v10 = vmax.f32 %v1120_v38, 0.0  ;;  %v1122_v5 = vpop.f32.mrb[23].mxu0  ;;  %1261 = vperm.xlu1 %2014, %v75_v23   ;;  %v78_v20 = vld [vmem:[#allocation6 + $0x18] sm:$0xff]  ;;  %v80_v22 = vld [vmem:[#allocation6 + $0x28] sm:$0xff] }
 0x13a   :  { %v422_v57 = vsel %vm411_vm0, nan, %v421_v40  ;;  %v835_v3 = vsel %vm411_vm0, nan, %v834_v44  ;;  %v1258_v28 = vmax.f32 %v1122_v5, 0.0  ;;  %v82_v56 = vld [vmem:[#allocation6 + $0x38] sm:$0xff] }
 0x13b   :  { %v1918_v58 = vpack.c.bf16 %v422_v57, %v214_v49  ;;  %v1922_v30 = vpack.c.bf16 %v835_v3, %v629_v37  ;;  %v1946_v55 = vpack.c.bf16 %v1257_v10, %v1255_v19 }
 0x13c   :  { %v1944_v47 = vpack.c.bf16 %v1258_v28, %v1256_v21 }
 0x13d   :  { %1919 = vmatpush1.bf16.msra.mxu0 %v1918_v58  ;;  %1266 = vperm.xlu1 %2014, %v76_v17  }
 0x13e   :  { %1921 = vmatprep.subr.bf16.mxu0 %v1920_v0 }
 0x141   :  { %1923 = vmatpush1.bf16.msra.mxu0 %v1922_v30  ;;  %1276 = vperm.xlu1 %2014, %v78_v20  }
 0x144   :  { %1897 = vmatmul.mubr.msk.f32.vlgmr.msra.gmra.mrb[0].mxu0 %vm1125_vm9, %v63_v34 }
 0x145   :  { %1208 = vmatprep.mubr.f32.mxu0 %v2107_v9  ;;  %1395 = vperm.xlu1 %2014, %v80_v22   ;;  %v1391_v22 = vpop.permute.xlu0 %1390 }
 0x148   :  { %1898 = vmatmul.mubr.msk.f32.gmra.mrb[2].mxu0 %vm1125_vm9, %v64_v2 }
 0x149   :  { %1214 = vmatprep.mubr.f32.mxu0 %v2107_v9  ;;  %1405 = vperm.xlu1 %2014, %v82_v56  }
 0x14c   :  { %1899 = vmatmul.mubr.msk.f32.gmra.mrb[4].mxu0 %vm1125_vm9, %v65_v43 }
 0x14d   :  { %1220 = vmatprep.mubr.f32.mxu0 %v2107_v9 }
 0x150   :  { %1900 = vmatmul.mubr.msk.f32.gmra.mrb[6].mxu0 %vm1125_vm9, %v66_v27 }
 0x151   :  { %1681 = vmatprep.mubr.f32.mxu0 %v2107_v9 }
 0x1b8   :  { %v1262_v24 = vpop.permute.xlu1 %1261 }
 0x1bc   :  { %v1267_v14 = vpop.permute.xlu1 %1266 }
 0x217   :  { %v1204_v29 = vpop.f32.mrb[0].mxu0 }
 0x218   :  { %v1206_v35 = vpop.f32.mrb[1].mxu0  ;;  %v1235_v40 = vmax.f32 %v1204_v29, 0.0 }
 0x219   :  { %v1236_v49 = vmax.f32 %v1206_v35, 0.0 }
 0x21b   :  { %v1210_v36 = vpop.f32.mrb[2].mxu0 }
 0x21c   :  { %v1237_v45 = vmax.f32 %v1210_v36, 0.0  ;;  %v1212_v44 = vpop.f32.mrb[3].mxu0 }
 0x21d   :  { %v1238_v57 = vmax.f32 %v1212_v44, 0.0 }
 0x21e   :  { %v1926_v58 = vpack.c.bf16 %v1237_v45, %v1235_v40 }
 0x21f   :  { %v1216_v62 = vpop.f32.mrb[4].mxu0  ;;  %v1924_v0 = vpack.c.bf16 %v1238_v57, %v1236_v49  ;;  %v86_v49 = vld [vmem:[%s2633_s4] sm:$0xff] }
 0x220   :  { %v1218_v3 = vpop.f32.mrb[5].mxu0  ;;  %v1239_v30 = vmax.f32 %v1216_v62, 0.0 }
 0x221   :  { %1925 = vmatprep.subr.bf16.mxu1 %v1924_v0  ;;  %v1240_v43 = vmax.f32 %v1218_v3, 0.0 }
 0x222   :  { %1927 = vmatpush1.bf16.msra.mxu1 %v1926_v58 }
 0x223   :  { %v1222_v37 = vpop.f32.mrb[6].mxu0 }
 0x224   :  { %v1241_v34 = vmax.f32 %v1222_v37, 0.0  ;;  %v1224_v2 = vpop.f32.mrb[7].mxu0 }
 0x225   :  { %v1242_v27 = vmax.f32 %v1224_v2, 0.0  ;;  %v1401_v2 = vpop.permute.xlu0 %1400 }
 0x226   :  { %v1930_v26 = vpack.c.bf16 %v1241_v34, %v1239_v30 }
 0x227   :  { %v1928_v7 = vpack.c.bf16 %v1242_v27, %v1240_v43 }
 0x229   :  { %1929 = vmatprep.subr.bf16.mxu1 %v1928_v7 }
 0x22a   :  { %1931 = vmatpush1.bf16.msra.mxu1 %v1930_v26 }
 0x22b   :  { %1933 = vmatprep.subr.bf16.mxu1 %v2576_v1  ;;  %v74_v1 = vld [vmem:[#allocation4 + $0x58] sm:$0xff] }
 0x22d   :  { %1901 = vmatmul.mubr.msk.f32.vlgmr.msra.gmra.mrb[0].mxu1 %vm1125_vm9, %v67_v25 }
 0x22e   :  { %1935 = vmatpush1.bf16.msra.mxu1 %v2574_v39  ;;  %1361 = vmatprep.mubr.f32.mxu1 %v2107_v9  ;;  %v73_v39 = vld [vmem:[#allocation4 + $0x50] sm:$0xff] }
 0x22f   :  { %1937 = vmatprep.subr.bf16.mxu1 %v1936_v61 }
 0x231   :  { %1902 = vmatmul.mubr.msk.f32.gmra.mrb[2].mxu1 %vm1125_vm9, %v68_v46 }
 0x232   :  { %1939 = vmatpush1.bf16.msra.mxu1 %v2578_v48  ;;  %1367 = vmatprep.mubr.f32.mxu1 %v2107_v9 }
 0x233   :  { %1941 = vmatprep.subr.bf16.mxu1 %v1940_v16 }
 0x235   :  { %1903 = vmatmul.mubr.msk.f32.gmra.mrb[4].mxu1 %vm1125_vm9, %v69_v54 }
 0x236   :  { %1373 = vmatprep.mubr.f32.mxu1 %v2107_v9 }
 0x239   :  { %1904 = vmatmul.mubr.msk.f32.gmra.mrb[6].mxu1 %vm1125_vm9, %v70_v41 }
 0x23a   :  { %1484 = vmatprep.mubr.f32.mxu1 %v2107_v9 }
 0x23d   :  { %1905 = vmatmul.mubr.msk.f32.vlgmr.msra.gmra.mrb[8].mxu1 %vm1125_vm9, %v71_v12 }
 0x23e   :  { %1943 = vmatpush1.bf16.msra.mxu1 %v2580_v18  ;;  %1490 = vmatprep.mubr.f32.mxu1 %v2107_v9  ;;  %v1277_v18 = vpop.permute.xlu1 %1276 }
 0x23f   :  { %1945 = vmatprep.subr.bf16.mxu1 %v1944_v47 }
 0x241   :  { %1906 = vmatmul.mubr.msk.f32.gmra.mrb[10].mxu1 %vm1125_vm9, %v72_v42 }
 0x242   :  { %1947 = vmatpush1.bf16.msra.mxu1 %v1946_v55  ;;  %1496 = vmatprep.mubr.f32.mxu1 %v2107_v9  ;;  %v1396_v29 = vpop.permute.xlu1 %1395 }
 0x245   :  { %1907 = vmatmul.mubr.msk.f32.gmra.mrb[12].mxu1 %vm1125_vm9, %v73_v39 }
 0x246   :  { %1502 = vmatprep.mubr.f32.mxu1 %v2107_v9  ;;  %v1406_v27 = vpop.permute.xlu1 %1405 }
 0x249   :  { %1908 = vmatmul.mubr.msk.f32.gmra.mrb[14].mxu1 %vm1125_vm9, %v74_v1 }
 0x24a   :  { %1581 = vmatprep.mubr.f32.mxu1 %v2107_v9 }
 0x24d   :  { %1909 = vmatmul.mubr.msk.f32.vlgmr.msra.gmra.mrb[16].mxu1 %vm1125_vm9, %v71_v12 }
 0x24e   :  { %1587 = vmatprep.mubr.f32.mxu1 %v2107_v9 }
 0x251   :  { %1910 = vmatmul.mubr.msk.f32.gmra.mrb[18].mxu1 %vm1125_vm9, %v72_v42 }
 0x252   :  { %1593 = vmatprep.mubr.f32.mxu1 %v2107_v9 }
 0x255   :  { %1911 = vmatmul.mubr.msk.f32.gmra.mrb[20].mxu1 %vm1125_vm9, %v73_v39 }
 0x256   :  { %1599 = vmatprep.mubr.f32.mxu1 %v2107_v9 }
 0x259   :  { %1912 = vmatmul.mubr.msk.f32.gmra.mrb[22].mxu1 %vm1125_vm9, %v74_v1 }
 0x25a   :  { %1755 = vmatprep.mubr.f32.mxu1 %v2107_v9 }
 0x300   :  { %v1357_v13 = vpop.f32.mrb[0].mxu1 }
 0x301   :  { %v1359_v6 = vpop.f32.mrb[1].mxu1  ;;  %v1358_v31 = vadd.f32 %v1357_v13, %v1262_v24 }
 0x302   :  { %v1360_v8 = vadd.f32 %v1359_v6, %v1262_v24 }
 0x303   :  { %v1380_v4 = vmax.f32 %v1358_v31, 0.0 }
 0x304   :  { %v1363_v32 = vpop.f32.mrb[2].mxu1  ;;  %v1381_v51 = vmax.f32 %v1360_v8, 0.0 }
 0x305   :  { %v1365_v15 = vpop.f32.mrb[3].mxu1  ;;  %v1364_v48 = vadd.f32 %v1363_v32, %v1267_v14 }
 0x306   :  { %v1366_v61 = vadd.f32 %v1365_v15, %v1267_v14 }
 0x307   :  { %v1382_v59 = vmax.f32 %v1364_v48, 0.0  ;;  %v87_v48 = vld [vmem:[%s2633_s4 + $0x8] sm:$0xff] }
 0x308   :  { %v1383_v33 = vmax.f32 %v1366_v61, 0.0  ;;  %v1369_v52 = vpop.f32.mrb[4].mxu1 }
 0x309   :  { %v1958_v60 = vpack.c.bf16 %v1382_v59, %v1380_v4  ;;  %v1371_v63 = vpop.f32.mrb[5].mxu1  ;;  %v1370_v50 = vadd.f32 %v1369_v52, %v1272_v53 }
 0x30a   :  { %v1956_v16 = vpack.c.bf16 %v1383_v33, %v1381_v51  ;;  %v1372_v11 = vadd.f32 %v1371_v63, %v1272_v53 }
 0x30b   :  { %v1384_v5 = vmax.f32 %v1370_v50, 0.0 }
 0x30c   :  { %v1375_v19 = vpop.f32.mrb[6].mxu1  ;;  %1957 = vmatprep.subr.bf16.mxu1 %v1956_v16  ;;  %v1385_v55 = vmax.f32 %v1372_v11, 0.0 }
 0x30d   :  { %v1376_v21 = vadd.f32 %v1375_v19, %v1277_v18  ;;  %v1377_v38 = vpop.f32.mrb[7].mxu1  ;;  %1959 = vmatpush1.bf16.msra.mxu1 %v1958_v60 }
 0x30e   :  { %v1378_v10 = vadd.f32 %v1377_v38, %v1277_v18 }
 0x30f   :  { %v1386_v28 = vmax.f32 %v1376_v21, 0.0 }
 0x310   :  { %v1387_v47 = vmax.f32 %v1378_v10, 0.0  ;;  %v1486_v23 = vpop.f32.mrb[8].mxu1 }
 0x311   :  { %v1962_v17 = vpack.c.bf16 %v1386_v28, %v1384_v5  ;;  %v1488_v20 = vpop.f32.mrb[9].mxu1  ;;  %v1487_v35 = vadd.f32 %v1486_v23, %v1391_v22  ;;  %v88_v23 = vld [vmem:[%s2633_s4 + $0x10] sm:$0xff] }
 0x312   :  { %v1960_v56 = vpack.c.bf16 %v1387_v47, %v1385_v55  ;;  %v1489_v36 = vadd.f32 %v1488_v20, %v1391_v22 }
 0x313   :  { %v1509_v58 = vmax.f32 %v1487_v35, 0.0  ;;  %v1841_v35 = vpop.permute.xlu0 %1840 }
 0x314   :  { %v1492_v40 = vpop.f32.mrb[10].mxu1  ;;  %1961 = vmatprep.subr.bf16.mxu1 %v1960_v56  ;;  %v1510_v0 = vmax.f32 %v1489_v36, 0.0 }
 0x315   :  { %v1493_v45 = vadd.f32 %v1492_v40, %v1396_v29  ;;  %v1494_v44 = vpop.f32.mrb[11].mxu1  ;;  %1963 = vmatpush1.bf16.msra.mxu1 %v1962_v17 }
 0x316   :  { %v1495_v57 = vadd.f32 %v1494_v44, %v1396_v29 }
 0x317   :  { %v1511_v62 = vmax.f32 %v1493_v45, 0.0 }
 0x318   :  { %v1512_v3 = vmax.f32 %v1495_v57, 0.0  ;;  %v1498_v37 = vpop.f32.mrb[12].mxu1  ;;  %1914 = vmatmul.mubr.msk.f32.vlgmr.msra.gmra.mrb[24].mxu1 %vm1125_vm9, %v86_v49 }
 0x319   :  { %v1950_v30 = vpack.c.bf16 %v1511_v62, %v1509_v58  ;;  %v1500_v34 = vpop.f32.mrb[13].mxu1  ;;  %1829 = vmatprep.mubr.f32.mxu1 %v2107_v9  ;;  %v1499_v26 = vadd.f32 %v1498_v37, %v1401_v2 }
 0x31a   :  { %v1948_v43 = vpack.c.bf16 %v1512_v3, %v1510_v0  ;;  %v1501_v7 = vadd.f32 %v1500_v34, %v1401_v2 }
 0x31b   :  { %v1513_v12 = vmax.f32 %v1499_v26, 0.0 }
 0x31c   :  { %v1504_v25 = vpop.f32.mrb[14].mxu1  ;;  %1949 = vmatprep.subr.bf16.mxu0 %v1948_v43  ;;  %v1514_v39 = vmax.f32 %v1501_v7, 0.0 }
 0x31d   :  { %v1505_v46 = vadd.f32 %v1504_v25, %v1406_v27  ;;  %v1506_v54 = vpop.f32.mrb[15].mxu1  ;;  %1951 = vmatpush1.bf16.msra.mxu0 %v1950_v30 }
 0x31e   :  { %v1507_v41 = vadd.f32 %v1506_v54, %v1406_v27 }
 0x31f   :  { %v1515_v42 = vmax.f32 %v1505_v46, 0.0 }
 0x320   :  { %v1516_v1 = vmax.f32 %v1507_v41, 0.0  ;;  %v1583_v24 = vpop.f32.mrb[16].mxu1 }
 0x321   :  { %v1954_v13 = vpack.c.bf16 %v1515_v42, %v1513_v12  ;;  %v1585_v6 = vpop.f32.mrb[17].mxu1  ;;  %v1584_v9 = vadd.f32 %v1583_v24, %v1391_v22 }
 0x322   :  { %v1952_v14 = vpack.c.bf16 %v1516_v1, %v1514_v39  ;;  %v1586_v31 = vadd.f32 %v1585_v6, %v1391_v22 }
 0x323   :  { %v1606_v4 = vmax.f32 %v1584_v9, 0.0 }
 0x324   :  { %v1589_v8 = vpop.f32.mrb[18].mxu1  ;;  %1953 = vmatprep.subr.bf16.mxu0 %v1952_v14  ;;  %v1607_v51 = vmax.f32 %v1586_v31, 0.0 }
 0x325   :  { %v1590_v32 = vadd.f32 %v1589_v8, %v1396_v29  ;;  %v1591_v15 = vpop.f32.mrb[19].mxu1  ;;  %1955 = vmatpush1.bf16.msra.mxu0 %v1954_v13 }
 0x326   :  { %v1592_v61 = vadd.f32 %v1591_v15, %v1396_v29 }
 0x327   :  { %v1608_v59 = vmax.f32 %v1590_v32, 0.0 }
 0x328   :  { %v1609_v33 = vmax.f32 %v1592_v61, 0.0  ;;  %v1595_v52 = vpop.f32.mrb[20].mxu1  ;;  %1913 = vmatmul.mubr.msk.f32.vlgmr.msra.gmra.mrb[24].mxu0 %vm1125_vm9, %v87_v48 }
 0x329   :  { %v1966_v60 = vpack.c.bf16 %v1608_v59, %v1606_v4  ;;  %v1597_v63 = vpop.f32.mrb[21].mxu1  ;;  %v1596_v18 = vadd.f32 %v1595_v52, %v1401_v2 }
 0x32a   :  { %v1964_v53 = vpack.c.bf16 %v1609_v33, %v1607_v51  ;;  %v1598_v16 = vadd.f32 %v1597_v63, %v1401_v2 }
 0x32b   :  { %v1610_v38 = vmax.f32 %v1596_v18, 0.0 }
 0x32c   :  { %v1601_v50 = vpop.f32.mrb[22].mxu1  ;;  %1965 = vmatprep.subr.bf16.mxu1 %v1964_v53  ;;  %v1611_v5 = vmax.f32 %v1598_v16, 0.0 }
 0x32d   :  { %v1602_v11 = vadd.f32 %v1601_v50, %v1406_v27  ;;  %v1603_v19 = vpop.f32.mrb[23].mxu1  ;;  %1967 = vmatpush1.bf16.msra.mxu1 %v1966_v60 }
 0x32e   :  { %v1604_v21 = vadd.f32 %v1603_v19, %v1406_v27 }
 0x32f   :  { %v1612_v10 = vmax.f32 %v1602_v11, 0.0 }
 0x330   :  { %v1613_v28 = vmax.f32 %v1604_v21, 0.0 }
 0x331   :  { %v1970_v55 = vpack.c.bf16 %v1612_v10, %v1610_v38 }
 0x332   :  { %v1968_v47 = vpack.c.bf16 %v1613_v28, %v1611_v5 }
 0x334   :  { %1969 = vmatprep.subr.bf16.mxu1 %v1968_v47 }
 0x335   :  { %1971 = vmatpush1.bf16.msra.mxu1 %v1970_v55 }
 0x338   :  { %1915 = vmatmul.mubr.msk.f32.vlgmr.msra.gmra.mrb[24].mxu1 %vm1125_vm9, %v88_v23 }
 0x3fb   :  { %v1683_v17 = vpop.f32.mrb[24].mxu0 }
 0x3fc   :  { %v1685_v20 = vpop.f32.mrb[25].mxu0 }
 0x40b   :  { %v1831_v22 = vpop.f32.mrb[24].mxu1 }
 0x40c   :  { %v1972_v56 = vadd.f32 %v1831_v22, %v1683_v17  ;;  %v1833_v29 = vpop.f32.mrb[25].mxu1 }
 0x40d   :  { %v1973_v36 = vadd.f32 %v1833_v29, %v1685_v20 }
 0x40e   :  { %v1843_v40 = vadd.f32 %v1972_v56, %v1841_v35 }
 0x40f   :  { %v1844_v45 = vadd.f32 %v1973_v36, %v1841_v35 }
 0x410   :  { %1845 = vst [vmem:[%s2634_s5] sm:$0xff] %v1843_v40 }
 0x411   :  { %1846 = vst [vmem:[%s2634_s5 + $0x8] sm:$0xff] %v1844_v45 }
 0x412   :  { %1851 = vsyncpa [#allocation3], 1 }
 0x413   :  { %1852 = vsyncpa [#allocation5], 1 }

</bundles_post_ra>
